<compile_context>
chip_gen: v7x
topology: tpu7x:2x2x1
jax: 0.10.0
libtpu: 0.0.40
codegen_flags: <defaults>
</compile_context>

<pallas_src>
import math
from functools import partial

import numpy as np
import jax
import jax.numpy as jnp
from jax.experimental import pallas as pl
from jax.experimental.pallas import tpu as pltpu

EPS = 1e-5                      # torch.nn.GroupNorm default eps
INV_SQRT2 = 1.0 / math.sqrt(2.0)


def _selection_matrix(l_in, l_out, k, stride, pad):
    """One-hot gather matrix S of shape (k*l_out, l_in).

    Row (dk*l_out + t) selects input row (stride*t + dk - pad); rows whose
    source index falls in the zero-pad region are all-zero, so S @ x
    reproduces Conv1d's zero padding exactly."""
    s = np.zeros((k * l_out, l_in), np.float32)
    for dk in range(k):
        for t in range(l_out):
            src = stride * t + dk - pad
            if 0 <= src < l_in:
                s[dk * l_out + t, src] = 1.0
    return s


def _make_encoder_kernel(layer_meta):
    """layer_meta: tuple of (kernel_size, l_out, inv_count) per layer."""
    n_layers = len(layer_meta)

    def kernel(*refs):
        x_ref = refs[0]
        sw = refs[1:1 + 2 * n_layers]                 # (S_0, W_0, S_1, W_1, ...)
        affine_ref, m_ref, mt_ref, out_ref = refs[1 + 2 * n_layers:]

        m = m_ref[...]                                # (C, G)  channel->group one-hot
        mt = mt_ref[...]                              # (G, C)  its transpose (precomputed)
        row_sel = jax.lax.broadcasted_iota(jnp.int32, (2, 1), 0)   # [[0],[1]]

        h = x_ref[0]                                  # (L0, C_in0), f32

        for li, (k, l_out, inv_count) in enumerate(layer_meta):
            s_ref = sw[2 * li]                        # (k*l_out, l_in)
            w_ref = sw[2 * li + 1]                    # (k, c_in, c_out)
            c_out = w_ref.shape[2]

            # --- Conv1d: gather/stride/pad via one selection matmul, then
            #     accumulate the k per-tap matmuls (all MXU, f32 accumulate).
            taps = jnp.dot(s_ref[...], h, preferred_element_type=jnp.float32)  # (k*l_out, c_in)
            acc = jnp.zeros((l_out, c_out), jnp.float32)
            for dk in range(k):
                acc = acc + jnp.dot(taps[dk * l_out:(dk + 1) * l_out, :],
                                    w_ref[dk],
                                    preferred_element_type=jnp.float32)

            aff = affine_ref[li]                      # (3, C): [bias, gamma, beta]
            y = acc + aff[0:1, :]                     # (l_out, C)

            # --- GroupNorm: per (sample, group) stats over (time, group chans).
            # Merge the sum / sum-of-squares reductions into one 2-row matmul.
            ch_sum = jnp.sum(y, axis=0, keepdims=True)          # (1, C)
            ch_sq = jnp.sum(y * y, axis=0, keepdims=True)       # (1, C)
            stats = jnp.where(row_sel == 0, ch_sum, ch_sq)      # (2, C) stacked
            g_stats = jnp.dot(stats, m,
                              preferred_element_type=jnp.float32) * inv_count   # (2, G)
            c_stats = jnp.dot(g_stats, mt,
                              preferred_element_type=jnp.float32)               # (2, C)
            mean_c = c_stats[0:1, :]
            var_c = jnp.maximum(c_stats[1:2, :] - mean_c * mean_c, 0.0)

            z = (y - mean_c) * jax.lax.rsqrt(var_c + EPS)
            z = z * aff[1:2, :] + aff[2:3, :]

            # --- Exact (erf) GELU, matching torch.nn.GELU default.
            h = 0.5 * z * (1.0 + jax.lax.erf(z * INV_SQRT2))

        out_ref[0] = h

    return kernel


@partial(jax.jit, static_argnums=(2, 3, 4))
def conv_encoder_forward(x_ncl, params, kernel_sizes, strides, num_groups):
    """Full ConvEncoder forward.  x_ncl: (N, C_in, L) (PyTorch NCL).
    Returns (N, C_out, L_final), matching the PyTorch module's output."""
    n, c_in, l_in = x_ncl.shape
    x_nlc = jnp.transpose(x_ncl, (0, 2, 1))           # -> (N, L, C)
    c_out = params[0][0].shape[0]
    cp = c_out // num_groups

    operands = [x_nlc]
    in_specs = [pl.BlockSpec((1, l_in, c_in), lambda i: (i, 0, 0))]
    layer_meta = []
    flops = 0
    trans = 0
    bytes_acc = x_nlc.size * 4

    l, c = l_in, c_in
    for (w, b, g, bt), k, s in zip(params, kernel_sizes, strides):
        pad = s // 2
        l_out = (l + 2 * pad - k) // s + 1
        sel = jnp.asarray(_selection_matrix(l, l_out, k, s, pad))     # (k*l_out, l)
        w_t = jnp.transpose(w, (2, 1, 0))                             # (k, c_in, c_out)
        operands += [sel, w_t]
        in_specs += [pl.BlockSpec((k * l_out, l), lambda i: (0, 0)),
                     pl.BlockSpec((k, c, c_out), lambda i: (0, 0, 0))]
        layer_meta.append((k, l_out, 1.0 / float(cp * l_out)))

        flops += n * (2 * (k * l_out) * l * c          # selection matmul
                      + 2 * k * l_out * c * c_out      # weight matmuls
                      + 8 * c_out * num_groups         # stat matmuls
                      + 10 * l_out * c_out)            # GN/GELU elementwise
        trans += n * (l_out * c_out + c_out)           # erf + rsqrt
        bytes_acc += n * (sel.size + w_t.size) * 4
        l, c = l_out, c_out

    affine = jnp.stack([jnp.stack([b, g, bt], axis=0)
                        for (_, b, g, bt) in params], axis=0)         # (nl, 3, C)
    gid = np.arange(c_out) // cp
    m_np = (gid[:, None] == np.arange(num_groups)[None, :]).astype(np.float32)
    m_arr = jnp.asarray(m_np)                                         # (C, G)
    mt_arr = jnp.asarray(np.ascontiguousarray(m_np.T))                # (G, C)
    operands += [affine, m_arr, mt_arr]
    in_specs += [pl.BlockSpec((len(params), 3, c_out), lambda i: (0, 0, 0)),
                 pl.BlockSpec((c_out, num_groups), lambda i: (0, 0)),
                 pl.BlockSpec((num_groups, c_out), lambda i: (0, 0))]
    bytes_acc += n * (affine.size + m_arr.size + mt_arr.size) * 4 + n * l * c_out * 4

    kernel = _make_encoder_kernel(tuple(layer_meta))
    out = pl.pallas_call(
        kernel,
        out_shape=jax.ShapeDtypeStruct((n, l, c_out), jnp.float32),
        grid=(n,),
        in_specs=in_specs,
        out_specs=pl.BlockSpec((1, l, c_out), lambda i: (i, 0, 0)),
        compiler_params=pltpu.CompilerParams(dimension_semantics=("parallel",)),
        cost_estimate=pl.CostEstimate(flops=int(flops),
                                      transcendentals=int(trans),
                                      bytes_accessed=int(bytes_acc)),
    )(*operands)

    return jnp.transpose(out, (0, 2, 1))               # -> (N, C, L_final)


def reference_forward(x_ncl, params, kernel_sizes, strides, num_groups):
    """Pure-JAX reference (lax.conv + GroupNorm + exact GELU) for validation."""
    h = x_ncl
    for (w, b, g, bt), k, s in zip(params, kernel_sizes, strides):
        pad = s // 2
        h = jax.lax.conv_general_dilated(
            h, w, window_strides=(s,), padding=[(pad, pad)],
            dimension_numbers=("NCH", "OIH", "NCH"))
        h = h + b[None, :, None]
        n, c, l = h.shape
        cp = c // num_groups
        hg = h.reshape(n, num_groups, cp * l)
        mean = hg.mean(axis=-1, keepdims=True)
        var = hg.var(axis=-1, keepdims=True)
        hn = ((hg - mean) / jnp.sqrt(var + EPS)).reshape(n, c, l)
        h = hn * g[None, :, None] + bt[None, :, None]
        h = 0.5 * h * (1.0 + jax.lax.erf(h * INV_SQRT2))
    return h


if __name__ == "__main__":
    # Small, deterministic config consistent with the module:
    # in_channels=2 (RF quadrature), out_channels=32, 3 conv layers.
    in_channels = 2
    out_channels = 32
    kernel_sizes = (3, 3, 3)
    strides = (3, 2, 2)
    num_groups = out_channels // 2          # GroupNorm(out_channels // 2, out_channels)
    batch, seq_len = 2, 96

    key = jax.random.PRNGKey(0)
    params = []
    c_in = in_channels
    for k in kernel_sizes:
        key, kw, kb = jax.random.split(key, 3)
        fan_in = c_in * k
        bound = 1.0 / math.sqrt(fan_in)     # torch Conv1d default init range
        w = jax.random.uniform(kw, (out_channels, c_in, k), jnp.float32, -bound, bound)
        b = jax.random.uniform(kb, (out_channels,), jnp.float32, -bound, bound)
        gamma = jnp.ones((out_channels,), jnp.float32)   # GroupNorm default affine init
        beta = jnp.zeros((out_channels,), jnp.float32)
        params.append((w, b, gamma, beta))
        c_in = out_channels

    # NOTE: Dropout2d(p=0.0) in eval/inference is the identity -> omitted.
    key, kx = jax.random.split(key)
    x = jax.random.normal(kx, (batch, in_channels, seq_len), jnp.float32)

    out = conv_encoder_forward(x, params, kernel_sizes, strides, num_groups)
    out = jax.block_until_ready(out)

    ref = reference_forward(x, params, kernel_sizes, strides, num_groups)
    assert out.shape == ref.shape, (out.shape, ref.shape)
    max_err = float(jnp.max(jnp.abs(out - ref)))
    assert jnp.allclose(out, ref, atol=1e-4, rtol=1e-4), max_err
    print("KERNEL_OK")
</pallas_src>

<mosaic_0001>
module attributes {stable_mosaic.version = 11 : i64} {
  func.func @kernel(%arg0: i32, %arg1: memref<1x96x2xf32, #tpu.memory_space<vmem>>, %arg2: memref<96x96xf32, #tpu.memory_space<vmem>>, %arg3: memref<3x2x32xf32, #tpu.memory_space<vmem>>, %arg4: memref<48x32xf32, #tpu.memory_space<vmem>>, %arg5: memref<3x32x32xf32, #tpu.memory_space<vmem>>, %arg6: memref<24x16xf32, #tpu.memory_space<vmem>>, %arg7: memref<3x32x32xf32, #tpu.memory_space<vmem>>, %arg8: memref<3x3x32xf32, #tpu.memory_space<vmem>>, %arg9: memref<32x16xf32, #tpu.memory_space<vmem>>, %arg10: memref<16x32xf32, #tpu.memory_space<vmem>>, %arg11: memref<1x8x32xf32, #tpu.memory_space<vmem>>) attributes {dimension_semantics = [#tpu.dimension_semantics<parallel>], iteration_bounds = array<i64: 2>, scalar_prefetch = 0 : i64, scratch_operands = 0 : i64, tpu.core_type = #tpu.core_type<tc>, window_params = [{transform_indices = @transform_0, window_bounds = array<i64: 1, 96, 2>}, {pipeline_mode = #tpu.pipeline_mode<synchronous>, transform_indices = @transform_1, window_bounds = array<i64: 96, 96>}, {pipeline_mode = #tpu.pipeline_mode<synchronous>, transform_indices = @transform_2, window_bounds = array<i64: 3, 2, 32>}, {pipeline_mode = #tpu.pipeline_mode<synchronous>, transform_indices = @transform_3, window_bounds = array<i64: 48, 32>}, {pipeline_mode = #tpu.pipeline_mode<synchronous>, transform_indices = @transform_4, window_bounds = array<i64: 3, 32, 32>}, {pipeline_mode = #tpu.pipeline_mode<synchronous>, transform_indices = @transform_5, window_bounds = array<i64: 24, 16>}, {pipeline_mode = #tpu.pipeline_mode<synchronous>, transform_indices = @transform_6, window_bounds = array<i64: 3, 32, 32>}, {pipeline_mode = #tpu.pipeline_mode<synchronous>, transform_indices = @transform_7, window_bounds = array<i64: 3, 3, 32>}, {pipeline_mode = #tpu.pipeline_mode<synchronous>, transform_indices = @transform_8, window_bounds = array<i64: 32, 16>}, {pipeline_mode = #tpu.pipeline_mode<synchronous>, transform_indices = @transform_9, window_bounds = array<i64: 16, 32>}, {transform_indices = @transform_10, window_bounds = array<i64: 1, 8, 32>}]} {
    %c0 = arith.constant 0 : index
    %c0_0 = arith.constant 0 : index
    %0 = vector.load %arg9[%c0, %c0_0] : memref<32x16xf32, #tpu.memory_space<vmem>>, vector<32x16xf32>
    %c0_1 = arith.constant 0 : index
    %c0_2 = arith.constant 0 : index
    %1 = vector.load %arg10[%c0_1, %c0_2] : memref<16x32xf32, #tpu.memory_space<vmem>>, vector<16x32xf32>
    %2 = tpu.iota {dimensions = array<i32: 0>} : vector<2x1xi32>
    %c0_3 = arith.constant 0 : index
    %c0_4 = arith.constant 0 : index
    %c0_5 = arith.constant 0 : index
    %3 = vector.load %arg1[%c0_3, %c0_4, %c0_5] : memref<1x96x2xf32, #tpu.memory_space<vmem>>, vector<1x96x2xf32>
    %4 = vector.shape_cast %3 : vector<1x96x2xf32> to vector<96x2xf32>
    %c0_6 = arith.constant 0 : index
    %c0_7 = arith.constant 0 : index
    %5 = vector.load %arg2[%c0_6, %c0_7] : memref<96x96xf32, #tpu.memory_space<vmem>>, vector<96x96xf32>
    %cst = arith.constant dense<0.000000e+00> : vector<96x2xf32>
    %6 = tpu.matmul %5, %4, %cst {dimension_numbers = #tpu.dot_dimension_numbers<[1], [0], [0], [1], [0, 0, 1, 1], [], []>} : vector<96x96xf32>, vector<96x2xf32>, vector<96x2xf32> -> vector<96x2xf32>
    %cst_8 = arith.constant 0.000000e+00 : f32
    %7 = vector.broadcast %cst_8 : f32 to vector<32x32xf32>
    %8 = vector.extract_strided_slice %6 {offsets = [0, 0], sizes = [32, 2], strides = [1, 1]} : vector<96x2xf32> to vector<32x2xf32>
    %c0_9 = arith.constant 0 : index
    %c0_10 = arith.constant 0 : index
    %c0_11 = arith.constant 0 : index
    %9 = vector.load %arg3[%c0_9, %c0_10, %c0_11] : memref<3x2x32xf32, #tpu.memory_space<vmem>>, vector<1x2x32xf32>
    %10 = vector.shape_cast %9 : vector<1x2x32xf32> to vector<2x32xf32>
    %cst_12 = arith.constant dense<0.000000e+00> : vector<32x32xf32>
    %11 = tpu.matmul %8, %10, %cst_12 {dimension_numbers = #tpu.dot_dimension_numbers<[1], [0], [0], [1], [0, 0, 1, 1], [], []>} : vector<32x2xf32>, vector<2x32xf32>, vector<32x32xf32> -> vector<32x32xf32>
    %12 = arith.addf %7, %11 : vector<32x32xf32>
    %13 = vector.extract_strided_slice %6 {offsets = [32, 0], sizes = [32, 2], strides = [1, 1]} : vector<96x2xf32> to vector<32x2xf32>
    %c1 = arith.constant 1 : index
    %c0_13 = arith.constant 0 : index
    %c0_14 = arith.constant 0 : index
    %14 = vector.load %arg3[%c1, %c0_13, %c0_14] : memref<3x2x32xf32, #tpu.memory_space<vmem>>, vector<1x2x32xf32>
    %15 = vector.shape_cast %14 : vector<1x2x32xf32> to vector<2x32xf32>
    %cst_15 = arith.constant dense<0.000000e+00> : vector<32x32xf32>
    %16 = tpu.matmul %13, %15, %cst_15 {dimension_numbers = #tpu.dot_dimension_numbers<[1], [0], [0], [1], [0, 0, 1, 1], [], []>} : vector<32x2xf32>, vector<2x32xf32>, vector<32x32xf32> -> vector<32x32xf32>
    %17 = arith.addf %12, %16 : vector<32x32xf32>
    %18 = vector.extract_strided_slice %6 {offsets = [64, 0], sizes = [32, 2], strides = [1, 1]} : vector<96x2xf32> to vector<32x2xf32>
    %c2 = arith.constant 2 : index
    %c0_16 = arith.constant 0 : index
    %c0_17 = arith.constant 0 : index
    %19 = vector.load %arg3[%c2, %c0_16, %c0_17] : memref<3x2x32xf32, #tpu.memory_space<vmem>>, vector<1x2x32xf32>
    %20 = vector.shape_cast %19 : vector<1x2x32xf32> to vector<2x32xf32>
    %cst_18 = arith.constant dense<0.000000e+00> : vector<32x32xf32>
    %21 = tpu.matmul %18, %20, %cst_18 {dimension_numbers = #tpu.dot_dimension_numbers<[1], [0], [0], [1], [0, 0, 1, 1], [], []>} : vector<32x2xf32>, vector<2x32xf32>, vector<32x32xf32> -> vector<32x32xf32>
    %22 = arith.addf %17, %21 : vector<32x32xf32>
    %c0_19 = arith.constant 0 : index
    %c0_20 = arith.constant 0 : index
    %c0_21 = arith.constant 0 : index
    %23 = vector.load %arg8[%c0_19, %c0_20, %c0_21] : memref<3x3x32xf32, #tpu.memory_space<vmem>>, vector<1x3x32xf32>
    %24 = vector.shape_cast %23 : vector<1x3x32xf32> to vector<3x32xf32>
    %25 = vector.extract_strided_slice %24 {offsets = [0, 0], sizes = [1, 32], strides = [1, 1]} : vector<3x32xf32> to vector<1x32xf32>
    %26 = vector.broadcast %25 : vector<1x32xf32> to vector<32x32xf32>
    %27 = arith.addf %22, %26 : vector<32x32xf32>
    %cst_22 = arith.constant dense<0.000000e+00> : vector<32xf32>
    %28 = vector.multi_reduction <add>, %27, %cst_22 [0] : vector<32x32xf32> to vector<32xf32>
    %29 = vector.shape_cast %28 : vector<32xf32> to vector<1x32xf32>
    %30 = arith.mulf %27, %27 : vector<32x32xf32>
    %cst_23 = arith.constant dense<0.000000e+00> : vector<32xf32>
    %31 = vector.multi_reduction <add>, %30, %cst_23 [0] : vector<32x32xf32> to vector<32xf32>
    %32 = vector.shape_cast %31 : vector<32xf32> to vector<1x32xf32>
    %c0_i32 = arith.constant 0 : i32
    %33 = vector.broadcast %c0_i32 : i32 to vector<2x1xi32>
    %34 = arith.cmpi eq, %2, %33 : vector<2x1xi32>
    %35 = vector.shape_cast %34 : vector<2x1xi1> to vector<2x1xi1>
    %36 = vector.broadcast %35 : vector<2x1xi1> to vector<2x32xi1>
    %37 = vector.shape_cast %29 : vector<1x32xf32> to vector<1x32xf32>
    %38 = vector.broadcast %37 : vector<1x32xf32> to vector<2x32xf32>
    %39 = vector.shape_cast %32 : vector<1x32xf32> to vector<1x32xf32>
    %40 = vector.broadcast %39 : vector<1x32xf32> to vector<2x32xf32>
    %41 = arith.select %36, %38, %40 : vector<2x32xi1>, vector<2x32xf32>
    %cst_24 = arith.constant dense<0.000000e+00> : vector<2x16xf32>
    %42 = tpu.matmul %41, %0, %cst_24 {dimension_numbers = #tpu.dot_dimension_numbers<[1], [0], [0], [1], [0, 0, 1, 1], [], []>} : vector<2x32xf32>, vector<32x16xf32>, vector<2x16xf32> -> vector<2x16xf32>
    %cst_25 = arith.constant 1.562500e-02 : f32
    %43 = vector.broadcast %cst_25 : f32 to vector<2x16xf32>
    %44 = arith.mulf %42, %43 : vector<2x16xf32>
    %cst_26 = arith.constant dense<0.000000e+00> : vector<2x32xf32>
    %45 = tpu.matmul %44, %1, %cst_26 {dimension_numbers = #tpu.dot_dimension_numbers<[1], [0], [0], [1], [0, 0, 1, 1], [], []>} : vector<2x16xf32>, vector<16x32xf32>, vector<2x32xf32> -> vector<2x32xf32>
    %46 = vector.extract_strided_slice %45 {offsets = [0, 0], sizes = [1, 32], strides = [1, 1]} : vector<2x32xf32> to vector<1x32xf32>
    %47 = vector.extract_strided_slice %45 {offsets = [1, 0], sizes = [1, 32], strides = [1, 1]} : vector<2x32xf32> to vector<1x32xf32>
    %48 = arith.mulf %46, %46 : vector<1x32xf32>
    %49 = arith.subf %47, %48 : vector<1x32xf32>
    %cst_27 = arith.constant 0.000000e+00 : f32
    %50 = vector.broadcast %cst_27 : f32 to vector<1x32xf32>
    %51 = arith.maximumf %49, %50 : vector<1x32xf32>
    %52 = vector.broadcast %46 : vector<1x32xf32> to vector<32x32xf32>
    %53 = arith.subf %27, %52 : vector<32x32xf32>
    %cst_28 = arith.constant 9.99999974E-6 : f32
    %54 = vector.broadcast %cst_28 : f32 to vector<1x32xf32>
    %55 = arith.addf %51, %54 : vector<1x32xf32>
    %56 = math.rsqrt %55 : vector<1x32xf32>
    %57 = vector.broadcast %56 : vector<1x32xf32> to vector<32x32xf32>
    %58 = arith.mulf %53, %57 : vector<32x32xf32>
    %59 = vector.extract_strided_slice %24 {offsets = [1, 0], sizes = [1, 32], strides = [1, 1]} : vector<3x32xf32> to vector<1x32xf32>
    %60 = vector.broadcast %59 : vector<1x32xf32> to vector<32x32xf32>
    %61 = arith.mulf %58, %60 : vector<32x32xf32>
    %62 = vector.extract_strided_slice %24 {offsets = [2, 0], sizes = [1, 32], strides = [1, 1]} : vector<3x32xf32> to vector<1x32xf32>
    %63 = vector.broadcast %62 : vector<1x32xf32> to vector<32x32xf32>
    %64 = arith.addf %61, %63 : vector<32x32xf32>
    %cst_29 = arith.constant 5.000000e-01 : f32
    %65 = vector.broadcast %cst_29 : f32 to vector<32x32xf32>
    %66 = arith.mulf %65, %64 : vector<32x32xf32>
    %cst_30 = arith.constant 0.707106769 : f32
    %67 = vector.broadcast %cst_30 : f32 to vector<32x32xf32>
    %68 = arith.mulf %64, %67 : vector<32x32xf32>
    %69 = math.erf %68 : vector<32x32xf32>
    %cst_31 = arith.constant 1.000000e+00 : f32
    %70 = vector.broadcast %cst_31 : f32 to vector<32x32xf32>
    %71 = arith.addf %70, %69 : vector<32x32xf32>
    %72 = arith.mulf %66, %71 : vector<32x32xf32>
    %c0_32 = arith.constant 0 : index
    %c0_33 = arith.constant 0 : index
    %73 = vector.load %arg4[%c0_32, %c0_33] : memref<48x32xf32, #tpu.memory_space<vmem>>, vector<48x32xf32>
    %cst_34 = arith.constant dense<0.000000e+00> : vector<48x32xf32>
    %74 = tpu.matmul %73, %72, %cst_34 {dimension_numbers = #tpu.dot_dimension_numbers<[1], [0], [0], [1], [0, 0, 1, 1], [], []>} : vector<48x32xf32>, vector<32x32xf32>, vector<48x32xf32> -> vector<48x32xf32>
    %cst_35 = arith.constant 0.000000e+00 : f32
    %75 = vector.broadcast %cst_35 : f32 to vector<16x32xf32>
    %76 = vector.extract_strided_slice %74 {offsets = [0, 0], sizes = [16, 32], strides = [1, 1]} : vector<48x32xf32> to vector<16x32xf32>
    %c0_36 = arith.constant 0 : index
    %c0_37 = arith.constant 0 : index
    %c0_38 = arith.constant 0 : index
    %77 = vector.load %arg5[%c0_36, %c0_37, %c0_38] : memref<3x32x32xf32, #tpu.memory_space<vmem>>, vector<1x32x32xf32>
    %78 = vector.shape_cast %77 : vector<1x32x32xf32> to vector<32x32xf32>
    %cst_39 = arith.constant dense<0.000000e+00> : vector<16x32xf32>
    %79 = tpu.matmul %76, %78, %cst_39 {dimension_numbers = #tpu.dot_dimension_numbers<[1], [0], [0], [1], [0, 0, 1, 1], [], []>} : vector<16x32xf32>, vector<32x32xf32>, vector<16x32xf32> -> vector<16x32xf32>
    %80 = arith.addf %75, %79 : vector<16x32xf32>
    %81 = vector.extract_strided_slice %74 {offsets = [16, 0], sizes = [16, 32], strides = [1, 1]} : vector<48x32xf32> to vector<16x32xf32>
    %c1_40 = arith.constant 1 : index
    %c0_41 = arith.constant 0 : index
    %c0_42 = arith.constant 0 : index
    %82 = vector.load %arg5[%c1_40, %c0_41, %c0_42] : memref<3x32x32xf32, #tpu.memory_space<vmem>>, vector<1x32x32xf32>
    %83 = vector.shape_cast %82 : vector<1x32x32xf32> to vector<32x32xf32>
    %cst_43 = arith.constant dense<0.000000e+00> : vector<16x32xf32>
    %84 = tpu.matmul %81, %83, %cst_43 {dimension_numbers = #tpu.dot_dimension_numbers<[1], [0], [0], [1], [0, 0, 1, 1], [], []>} : vector<16x32xf32>, vector<32x32xf32>, vector<16x32xf32> -> vector<16x32xf32>
    %85 = arith.addf %80, %84 : vector<16x32xf32>
    %86 = vector.extract_strided_slice %74 {offsets = [32, 0], sizes = [16, 32], strides = [1, 1]} : vector<48x32xf32> to vector<16x32xf32>
    %c2_44 = arith.constant 2 : index
    %c0_45 = arith.constant 0 : index
    %c0_46 = arith.constant 0 : index
    %87 = vector.load %arg5[%c2_44, %c0_45, %c0_46] : memref<3x32x32xf32, #tpu.memory_space<vmem>>, vector<1x32x32xf32>
    %88 = vector.shape_cast %87 : vector<1x32x32xf32> to vector<32x32xf32>
    %cst_47 = arith.constant dense<0.000000e+00> : vector<16x32xf32>
    %89 = tpu.matmul %86, %88, %cst_47 {dimension_numbers = #tpu.dot_dimension_numbers<[1], [0], [0], [1], [0, 0, 1, 1], [], []>} : vector<16x32xf32>, vector<32x32xf32>, vector<16x32xf32> -> vector<16x32xf32>
    %90 = arith.addf %85, %89 : vector<16x32xf32>
    %c1_48 = arith.constant 1 : index
    %c0_49 = arith.constant 0 : index
    %c0_50 = arith.constant 0 : index
    %91 = vector.load %arg8[%c1_48, %c0_49, %c0_50] : memref<3x3x32xf32, #tpu.memory_space<vmem>>, vector<1x3x32xf32>
    %92 = vector.shape_cast %91 : vector<1x3x32xf32> to vector<3x32xf32>
    %93 = vector.extract_strided_slice %92 {offsets = [0, 0], sizes = [1, 32], strides = [1, 1]} : vector<3x32xf32> to vector<1x32xf32>
    %94 = vector.broadcast %93 : vector<1x32xf32> to vector<16x32xf32>
    %95 = arith.addf %90, %94 : vector<16x32xf32>
    %cst_51 = arith.constant dense<0.000000e+00> : vector<32xf32>
    %96 = vector.multi_reduction <add>, %95, %cst_51 [0] : vector<16x32xf32> to vector<32xf32>
    %97 = vector.shape_cast %96 : vector<32xf32> to vector<1x32xf32>
    %98 = arith.mulf %95, %95 : vector<16x32xf32>
    %cst_52 = arith.constant dense<0.000000e+00> : vector<32xf32>
    %99 = vector.multi_reduction <add>, %98, %cst_52 [0] : vector<16x32xf32> to vector<32xf32>
    %100 = vector.shape_cast %99 : vector<32xf32> to vector<1x32xf32>
    %c0_i32_53 = arith.constant 0 : i32
    %101 = vector.broadcast %c0_i32_53 : i32 to vector<2x1xi32>
    %102 = arith.cmpi eq, %2, %101 : vector<2x1xi32>
    %103 = vector.shape_cast %102 : vector<2x1xi1> to vector<2x1xi1>
    %104 = vector.broadcast %103 : vector<2x1xi1> to vector<2x32xi1>
    %105 = vector.shape_cast %97 : vector<1x32xf32> to vector<1x32xf32>
    %106 = vector.broadcast %105 : vector<1x32xf32> to vector<2x32xf32>
    %107 = vector.shape_cast %100 : vector<1x32xf32> to vector<1x32xf32>
    %108 = vector.broadcast %107 : vector<1x32xf32> to vector<2x32xf32>
    %109 = arith.select %104, %106, %108 : vector<2x32xi1>, vector<2x32xf32>
    %cst_54 = arith.constant dense<0.000000e+00> : vector<2x16xf32>
    %110 = tpu.matmul %109, %0, %cst_54 {dimension_numbers = #tpu.dot_dimension_numbers<[1], [0], [0], [1], [0, 0, 1, 1], [], []>} : vector<2x32xf32>, vector<32x16xf32>, vector<2x16xf32> -> vector<2x16xf32>
    %cst_55 = arith.constant 3.125000e-02 : f32
    %111 = vector.broadcast %cst_55 : f32 to vector<2x16xf32>
    %112 = arith.mulf %110, %111 : vector<2x16xf32>
    %cst_56 = arith.constant dense<0.000000e+00> : vector<2x32xf32>
    %113 = tpu.matmul %112, %1, %cst_56 {dimension_numbers = #tpu.dot_dimension_numbers<[1], [0], [0], [1], [0, 0, 1, 1], [], []>} : vector<2x16xf32>, vector<16x32xf32>, vector<2x32xf32> -> vector<2x32xf32>
    %114 = vector.extract_strided_slice %113 {offsets = [0, 0], sizes = [1, 32], strides = [1, 1]} : vector<2x32xf32> to vector<1x32xf32>
    %115 = vector.extract_strided_slice %113 {offsets = [1, 0], sizes = [1, 32], strides = [1, 1]} : vector<2x32xf32> to vector<1x32xf32>
    %116 = arith.mulf %114, %114 : vector<1x32xf32>
    %117 = arith.subf %115, %116 : vector<1x32xf32>
    %cst_57 = arith.constant 0.000000e+00 : f32
    %118 = vector.broadcast %cst_57 : f32 to vector<1x32xf32>
    %119 = arith.maximumf %117, %118 : vector<1x32xf32>
    %120 = vector.broadcast %114 : vector<1x32xf32> to vector<16x32xf32>
    %121 = arith.subf %95, %120 : vector<16x32xf32>
    %cst_58 = arith.constant 9.99999974E-6 : f32
    %122 = vector.broadcast %cst_58 : f32 to vector<1x32xf32>
    %123 = arith.addf %119, %122 : vector<1x32xf32>
    %124 = math.rsqrt %123 : vector<1x32xf32>
    %125 = vector.broadcast %124 : vector<1x32xf32> to vector<16x32xf32>
    %126 = arith.mulf %121, %125 : vector<16x32xf32>
    %127 = vector.extract_strided_slice %92 {offsets = [1, 0], sizes = [1, 32], strides = [1, 1]} : vector<3x32xf32> to vector<1x32xf32>
    %128 = vector.broadcast %127 : vector<1x32xf32> to vector<16x32xf32>
    %129 = arith.mulf %126, %128 : vector<16x32xf32>
    %130 = vector.extract_strided_slice %92 {offsets = [2, 0], sizes = [1, 32], strides = [1, 1]} : vector<3x32xf32> to vector<1x32xf32>
    %131 = vector.broadcast %130 : vector<1x32xf32> to vector<16x32xf32>
    %132 = arith.addf %129, %131 : vector<16x32xf32>
    %cst_59 = arith.constant 5.000000e-01 : f32
    %133 = vector.broadcast %cst_59 : f32 to vector<16x32xf32>
    %134 = arith.mulf %133, %132 : vector<16x32xf32>
    %cst_60 = arith.constant 0.707106769 : f32
    %135 = vector.broadcast %cst_60 : f32 to vector<16x32xf32>
    %136 = arith.mulf %132, %135 : vector<16x32xf32>
    %137 = math.erf %136 : vector<16x32xf32>
    %cst_61 = arith.constant 1.000000e+00 : f32
    %138 = vector.broadcast %cst_61 : f32 to vector<16x32xf32>
    %139 = arith.addf %138, %137 : vector<16x32xf32>
    %140 = arith.mulf %134, %139 : vector<16x32xf32>
    %c0_62 = arith.constant 0 : index
    %c0_63 = arith.constant 0 : index
    %141 = vector.load %arg6[%c0_62, %c0_63] : memref<24x16xf32, #tpu.memory_space<vmem>>, vector<24x16xf32>
    %cst_64 = arith.constant dense<0.000000e+00> : vector<24x32xf32>
    %142 = tpu.matmul %141, %140, %cst_64 {dimension_numbers = #tpu.dot_dimension_numbers<[1], [0], [0], [1], [0, 0, 1, 1], [], []>} : vector<24x16xf32>, vector<16x32xf32>, vector<24x32xf32> -> vector<24x32xf32>
    %cst_65 = arith.constant 0.000000e+00 : f32
    %143 = vector.broadcast %cst_65 : f32 to vector<8x32xf32>
    %144 = vector.extract_strided_slice %142 {offsets = [0, 0], sizes = [8, 32], strides = [1, 1]} : vector<24x32xf32> to vector<8x32xf32>
    %c0_66 = arith.constant 0 : index
    %c0_67 = arith.constant 0 : index
    %c0_68 = arith.constant 0 : index
    %145 = vector.load %arg7[%c0_66, %c0_67, %c0_68] : memref<3x32x32xf32, #tpu.memory_space<vmem>>, vector<1x32x32xf32>
    %146 = vector.shape_cast %145 : vector<1x32x32xf32> to vector<32x32xf32>
    %cst_69 = arith.constant dense<0.000000e+00> : vector<8x32xf32>
    %147 = tpu.matmul %144, %146, %cst_69 {dimension_numbers = #tpu.dot_dimension_numbers<[1], [0], [0], [1], [0, 0, 1, 1], [], []>} : vector<8x32xf32>, vector<32x32xf32>, vector<8x32xf32> -> vector<8x32xf32>
    %148 = arith.addf %143, %147 : vector<8x32xf32>
    %149 = vector.extract_strided_slice %142 {offsets = [8, 0], sizes = [8, 32], strides = [1, 1]} : vector<24x32xf32> to vector<8x32xf32>
    %c1_70 = arith.constant 1 : index
    %c0_71 = arith.constant 0 : index
    %c0_72 = arith.constant 0 : index
    %150 = vector.load %arg7[%c1_70, %c0_71, %c0_72] : memref<3x32x32xf32, #tpu.memory_space<vmem>>, vector<1x32x32xf32>
    %151 = vector.shape_cast %150 : vector<1x32x32xf32> to vector<32x32xf32>
    %cst_73 = arith.constant dense<0.000000e+00> : vector<8x32xf32>
    %152 = tpu.matmul %149, %151, %cst_73 {dimension_numbers = #tpu.dot_dimension_numbers<[1], [0], [0], [1], [0, 0, 1, 1], [], []>} : vector<8x32xf32>, vector<32x32xf32>, vector<8x32xf32> -> vector<8x32xf32>
    %153 = arith.addf %148, %152 : vector<8x32xf32>
    %154 = vector.extract_strided_slice %142 {offsets = [16, 0], sizes = [8, 32], strides = [1, 1]} : vector<24x32xf32> to vector<8x32xf32>
    %c2_74 = arith.constant 2 : index
    %c0_75 = arith.constant 0 : index
    %c0_76 = arith.constant 0 : index
    %155 = vector.load %arg7[%c2_74, %c0_75, %c0_76] : memref<3x32x32xf32, #tpu.memory_space<vmem>>, vector<1x32x32xf32>
    %156 = vector.shape_cast %155 : vector<1x32x32xf32> to vector<32x32xf32>
    %cst_77 = arith.constant dense<0.000000e+00> : vector<8x32xf32>
    %157 = tpu.matmul %154, %156, %cst_77 {dimension_numbers = #tpu.dot_dimension_numbers<[1], [0], [0], [1], [0, 0, 1, 1], [], []>} : vector<8x32xf32>, vector<32x32xf32>, vector<8x32xf32> -> vector<8x32xf32>
    %158 = arith.addf %153, %157 : vector<8x32xf32>
    %c2_78 = arith.constant 2 : index
    %c0_79 = arith.constant 0 : index
    %c0_80 = arith.constant 0 : index
    %159 = vector.load %arg8[%c2_78, %c0_79, %c0_80] : memref<3x3x32xf32, #tpu.memory_space<vmem>>, vector<1x3x32xf32>
    %160 = vector.shape_cast %159 : vector<1x3x32xf32> to vector<3x32xf32>
    %161 = vector.extract_strided_slice %160 {offsets = [0, 0], sizes = [1, 32], strides = [1, 1]} : vector<3x32xf32> to vector<1x32xf32>
    %162 = vector.broadcast %161 : vector<1x32xf32> to vector<8x32xf32>
    %163 = arith.addf %158, %162 : vector<8x32xf32>
    %cst_81 = arith.constant dense<0.000000e+00> : vector<32xf32>
    %164 = vector.multi_reduction <add>, %163, %cst_81 [0] : vector<8x32xf32> to vector<32xf32>
    %165 = vector.shape_cast %164 : vector<32xf32> to vector<1x32xf32>
    %166 = arith.mulf %163, %163 : vector<8x32xf32>
    %cst_82 = arith.constant dense<0.000000e+00> : vector<32xf32>
    %167 = vector.multi_reduction <add>, %166, %cst_82 [0] : vector<8x32xf32> to vector<32xf32>
    %168 = vector.shape_cast %167 : vector<32xf32> to vector<1x32xf32>
    %c0_i32_83 = arith.constant 0 : i32
    %169 = vector.broadcast %c0_i32_83 : i32 to vector<2x1xi32>
    %170 = arith.cmpi eq, %2, %169 : vector<2x1xi32>
    %171 = vector.shape_cast %170 : vector<2x1xi1> to vector<2x1xi1>
    %172 = vector.broadcast %171 : vector<2x1xi1> to vector<2x32xi1>
    %173 = vector.shape_cast %165 : vector<1x32xf32> to vector<1x32xf32>
    %174 = vector.broadcast %173 : vector<1x32xf32> to vector<2x32xf32>
    %175 = vector.shape_cast %168 : vector<1x32xf32> to vector<1x32xf32>
    %176 = vector.broadcast %175 : vector<1x32xf32> to vector<2x32xf32>
    %177 = arith.select %172, %174, %176 : vector<2x32xi1>, vector<2x32xf32>
    %cst_84 = arith.constant dense<0.000000e+00> : vector<2x16xf32>
    %178 = tpu.matmul %177, %0, %cst_84 {dimension_numbers = #tpu.dot_dimension_numbers<[1], [0], [0], [1], [0, 0, 1, 1], [], []>} : vector<2x32xf32>, vector<32x16xf32>, vector<2x16xf32> -> vector<2x16xf32>
    %cst_85 = arith.constant 6.250000e-02 : f32
    %179 = vector.broadcast %cst_85 : f32 to vector<2x16xf32>
    %180 = arith.mulf %178, %179 : vector<2x16xf32>
    %cst_86 = arith.constant dense<0.000000e+00> : vector<2x32xf32>
    %181 = tpu.matmul %180, %1, %cst_86 {dimension_numbers = #tpu.dot_dimension_numbers<[1], [0], [0], [1], [0, 0, 1, 1], [], []>} : vector<2x16xf32>, vector<16x32xf32>, vector<2x32xf32> -> vector<2x32xf32>
    %182 = vector.extract_strided_slice %181 {offsets = [0, 0], sizes = [1, 32], strides = [1, 1]} : vector<2x32xf32> to vector<1x32xf32>
    %183 = vector.extract_strided_slice %181 {offsets = [1, 0], sizes = [1, 32], strides = [1, 1]} : vector<2x32xf32> to vector<1x32xf32>
    %184 = arith.mulf %182, %182 : vector<1x32xf32>
    %185 = arith.subf %183, %184 : vector<1x32xf32>
    %cst_87 = arith.constant 0.000000e+00 : f32
    %186 = vector.broadcast %cst_87 : f32 to vector<1x32xf32>
    %187 = arith.maximumf %185, %186 : vector<1x32xf32>
    %188 = vector.broadcast %182 : vector<1x32xf32> to vector<8x32xf32>
    %189 = arith.subf %163, %188 : vector<8x32xf32>
    %cst_88 = arith.constant 9.99999974E-6 : f32
    %190 = vector.broadcast %cst_88 : f32 to vector<1x32xf32>
    %191 = arith.addf %187, %190 : vector<1x32xf32>
    %192 = math.rsqrt %191 : vector<1x32xf32>
    %193 = vector.broadcast %192 : vector<1x32xf32> to vector<8x32xf32>
    %194 = arith.mulf %189, %193 : vector<8x32xf32>
    %195 = vector.extract_strided_slice %160 {offsets = [1, 0], sizes = [1, 32], strides = [1, 1]} : vector<3x32xf32> to vector<1x32xf32>
    %196 = vector.broadcast %195 : vector<1x32xf32> to vector<8x32xf32>
    %197 = arith.mulf %194, %196 : vector<8x32xf32>
    %198 = vector.extract_strided_slice %160 {offsets = [2, 0], sizes = [1, 32], strides = [1, 1]} : vector<3x32xf32> to vector<1x32xf32>
    %199 = vector.broadcast %198 : vector<1x32xf32> to vector<8x32xf32>
    %200 = arith.addf %197, %199 : vector<8x32xf32>
    %cst_89 = arith.constant 5.000000e-01 : f32
    %201 = vector.broadcast %cst_89 : f32 to vector<8x32xf32>
    %202 = arith.mulf %201, %200 : vector<8x32xf32>
    %cst_90 = arith.constant 0.707106769 : f32
    %203 = vector.broadcast %cst_90 : f32 to vector<8x32xf32>
    %204 = arith.mulf %200, %203 : vector<8x32xf32>
    %205 = math.erf %204 : vector<8x32xf32>
    %cst_91 = arith.constant 1.000000e+00 : f32
    %206 = vector.broadcast %cst_91 : f32 to vector<8x32xf32>
    %207 = arith.addf %206, %205 : vector<8x32xf32>
    %208 = arith.mulf %202, %207 : vector<8x32xf32>
    %c0_92 = arith.constant 0 : index
    %c0_93 = arith.constant 0 : index
    %c0_94 = arith.constant 0 : index
    %209 = vector.load %arg11[%c0_92, %c0_93, %c0_94] : memref<1x8x32xf32, #tpu.memory_space<vmem>>, vector<1x8x32xf32>
    %210 = vector.shape_cast %209 : vector<1x8x32xf32> to vector<8x32xf32>
    %211 = vector.shape_cast %208 : vector<8x32xf32> to vector<1x8x32xf32>
    tpu.vector_store %arg11[%c0_92, %c0_93, %c0_94], %211 {strides = array<i32>} : memref<1x8x32xf32, #tpu.memory_space<vmem>>, vector<1x8x32xf32>,
    return
  }
  func.func @transform_0(%arg0: i32) -> (i32, i32, i32) {
    %c0_i32 = arith.constant 0 : i32
    %c0_i32_0 = arith.constant 0 : i32
    %c0_i32_1 = arith.constant 0 : i32
    return %arg0, %c0_i32, %c0_i32_0 : i32, i32, i32
  }
  func.func @transform_1(%arg0: i32) -> (i32, i32) {
    %c0_i32 = arith.constant 0 : i32
    %c0_i32_0 = arith.constant 0 : i32
    %c0_i32_1 = arith.constant 0 : i32
    return %c0_i32, %c0_i32_0 : i32, i32
  }
  func.func @transform_2(%arg0: i32) -> (i32, i32, i32) {
    %c0_i32 = arith.constant 0 : i32
    %c0_i32_0 = arith.constant 0 : i32
    %c0_i32_1 = arith.constant 0 : i32
    %c0_i32_2 = arith.constant 0 : i32
    return %c0_i32, %c0_i32_0, %c0_i32_1 : i32, i32, i32
  }
  func.func @transform_3(%arg0: i32) -> (i32, i32) {
    %c0_i32 = arith.constant 0 : i32
    %c0_i32_0 = arith.constant 0 : i32
    %c0_i32_1 = arith.constant 0 : i32
    return %c0_i32, %c0_i32_0 : i32, i32
  }
  func.func @transform_4(%arg0: i32) -> (i32, i32, i32) {
    %c0_i32 = arith.constant 0 : i32
    %c0_i32_0 = arith.constant 0 : i32
    %c0_i32_1 = arith.constant 0 : i32
    %c0_i32_2 = arith.constant 0 : i32
    return %c0_i32, %c0_i32_0, %c0_i32_1 : i32, i32, i32
  }
  func.func @transform_5(%arg0: i32) -> (i32, i32) {
    %c0_i32 = arith.constant 0 : i32
    %c0_i32_0 = arith.constant 0 : i32
    %c0_i32_1 = arith.constant 0 : i32
    return %c0_i32, %c0_i32_0 : i32, i32
  }
  func.func @transform_6(%arg0: i32) -> (i32, i32, i32) {
    %c0_i32 = arith.constant 0 : i32
    %c0_i32_0 = arith.constant 0 : i32
    %c0_i32_1 = arith.constant 0 : i32
    %c0_i32_2 = arith.constant 0 : i32
    return %c0_i32, %c0_i32_0, %c0_i32_1 : i32, i32, i32
  }
  func.func @transform_7(%arg0: i32) -> (i32, i32, i32) {
    %c0_i32 = arith.constant 0 : i32
    %c0_i32_0 = arith.constant 0 : i32
    %c0_i32_1 = arith.constant 0 : i32
    %c0_i32_2 = arith.constant 0 : i32
    return %c0_i32, %c0_i32_0, %c0_i32_1 : i32, i32, i32
  }
  func.func @transform_8(%arg0: i32) -> (i32, i32) {
    %c0_i32 = arith.constant 0 : i32
    %c0_i32_0 = arith.constant 0 : i32
    %c0_i32_1 = arith.constant 0 : i32
    return %c0_i32, %c0_i32_0 : i32, i32
  }
  func.func @transform_9(%arg0: i32) -> (i32, i32) {
    %c0_i32 = arith.constant 0 : i32
    %c0_i32_0 = arith.constant 0 : i32
    %c0_i32_1 = arith.constant 0 : i32
    return %c0_i32, %c0_i32_0 : i32, i32
  }
  func.func @transform_10(%arg0: i32) -> (i32, i32, i32) {
    %c0_i32 = arith.constant 0 : i32
    %c0_i32_0 = arith.constant 0 : i32
    %c0_i32_1 = arith.constant 0 : i32
    return %arg0, %c0_i32, %c0_i32_0 : i32, i32, i32
  }
}

</mosaic_0001>

<bundles_post_ra>
// kernel: conv_encoder_forward.1
= control target key start
LH: loop header
LB: loop body
LE: loop exit
PB: predicated region body
PF: predicated region fallthrough
CT: control target
= control target key end

     0   :  { %15 = vsyncpa [#allocation3], 0  ;;  %s3481_s0 = inlined_call_operand.vmem [shape: f32[2,96,2], index: 0, kind: input, shape index: {}]   ;;  %s3482_s1 = inlined_call_operand.vmem [shape: f32[96,96], index: 1, kind: input, shape index: {}]   ;;  %s3483_s2 = inlined_call_operand.vmem [shape: f32[3,2,32], index: 2, kind: input, shape index: {}]   ;;  %s3484_s3 = inlined_call_operand.vmem [shape: f32[48,32], index: 3, kind: input, shape index: {}]   ;;  %s3485_s4 = inlined_call_operand.vmem [shape: f32[3,32,32], index: 4, kind: input, shape index: {}]   ;;  %s3486_s5 = inlined_call_operand.vmem [shape: f32[24,16], index: 5, kind: input, shape index: {}]   ;;  %s3487_s6 = inlined_call_operand.vmem [shape: f32[3,32,32], index: 6, kind: input, shape index: {}]   ;;  %s3488_s7 = inlined_call_operand.vmem [shape: f32[3,3,32], index: 7, kind: input, shape index: {}]   ;;  %s3489_s8 = inlined_call_operand.vmem [shape: f32[32,16], index: 8, kind: input, shape index: {}]   ;;  %s3490_s9 = inlined_call_operand.vmem [shape: f32[16,32], index: 9, kind: input, shape index: {}]   ;;  %s3491_s10 = inlined_call_operand.hbm [shape: f32[2,8,32], index: 10, kind: output, shape index: {}]  }
   0x1   :  { %17 = vsyncpa [#allocation3 + $0x1], 0  ;;  %s3024_s13 = smov 0   ;;  %s3026_s14 = smov 0  }
   0x2   :  { %s3028_s15 = smov 0   ;;  %s3030_s16 = smov 0  }
   0x3 LB: > { %s3045_s17 = sadd.s32 4294967295, %s2963_s16   ;;  %s2314_s18 = sadd.s32 4294967294, %s2963_s16   ;;  %s2963_s16 = sphi %s3030_s16, %s3497_s16   ;;  %s2959_s15 = sphi %s3028_s15, %s3496_s15   ;;  %s2955_s14 = sphi %s3026_s14, %s3495_s14   ;;  %s2951_s13 = sphi %s3024_s13, %s3494_s13  }
   0x4   : > { %s3049_s19 = sadd.s32 1, %s2963_s16   ;;  %s245_s20 = sadd.s32 1, %s2959_s15 }
   0x5   : > { %s242_s21 = ssub.s32 %s2963_s16, %s3049_s19  ;;  %p255_p0 = scmp.ne.s32.totalorder %s2959_s15, %s2955_s14 }
   0x6   : > { %p243_p1 = scmp.eq.s32.totalorder %s242_s21, 0  ;;  %p256_p2 = scmp.eq.s32.totalorder %s3045_s17, 1 }
   0x7   : > { %p261_p3 = scmp.ne.s32.totalorder %s2955_s14, %s2951_s13  ;;  %p262_p4 = scmp.eq.s32.totalorder %s2314_s18, 1 }
   0x8   : > { %s3060_s22 = scalar_select %p243_p1, %s2959_s15, %s245_s20  }
   0x9   : > { %p3062_p5 = por %p256_p2, %p255_p0  ;;  %p3066_p6 = por %p262_p4, %p261_p3 }
   0xa   : > { %p2317_p7 = scmp.ge.s32.totalorder %s2963_s16, 1  ;;  %p315_p8 = scmp.lt.s32.totalorder %s2963_s16, 3 }
   0xc   : > { %p316_p9 = pnand %p2317_p7, %p315_p8 }
   0xd   : > { %p353_p10 = scmp.lt.s32.totalorder (!%p316_p9), %s3045_s17, 1  ;;  %v378_v0 = vld [vmem:[%s3482_s1] sm:$0xff] (!%p316_p9)  ;;  %vm390_vm0 = vcmask (!%p316_p9), 785408   ;;  %v379_v19 = vld [vmem:[%s3482_s1 + $0x8] sm:$0xff] (!%p316_p9)  ;;  %v380_v20 = vld [vmem:[%s3482_s1 + $0x10] sm:$0xff] (!%p316_p9)  ;;  %vm568_vm1 = vcmask (!%p316_p9), 1041408   ;;  %v364_v53 = vlaneseq (!%p316_p9) }
   0xe   : > { %319 = sbr.rel (%p316_p9) target bundleno = 2900 (0xb54), region = 60  ;;  %2530 = vmatprep.mubr.msk.f32.mxu0 (!%p316_p9), %vm390_vm0, %v378_v0  ;;  %v381_v21 = vld [vmem:[%s3482_s1 + $0x18] sm:$0xff] (!%p316_p9)  ;;  %v382_v22 = vld [vmem:[%s3482_s1 + $0x20] sm:$0xff] (!%p316_p9)  ;;  %v383_v23 = vld [vmem:[%s3482_s1 + $0x28] sm:$0xff] (!%p316_p9)  ;;  %vm555_vm2 = vcmask (!%p316_p9), 15360   ;;  %v2965_v48 = vmov (!%p316_p9), 0.0|0.0  }
   0xf   : > { %v384_v24 = vld [vmem:[%s3482_s1 + $0x30] sm:$0xff] (!%p316_p9)  ;;  %v385_v25 = vld [vmem:[%s3482_s1 + $0x38] sm:$0xff] (!%p316_p9)  ;;  %v386_v26 = vld [vmem:[%s3482_s1 + $0x40] sm:$0xff] (!%p316_p9)  ;;  %vm2966_vm3 = vmmov (!%p316_p9), 0   ;;  %v2967_v52 = vmov (!%p316_p9), 0.0   ;;  %v3175_v54 = vshrl.u32 (!%p316_p9), %v364_v53, 7 }
  0x10   : > { %v387_v27 = vld [vmem:[%s3482_s1 + $0x48] sm:$0xff] (!%p316_p9)  ;;  %v388_v28 = vld [vmem:[%s3482_s1 + $0x50] sm:$0xff] (!%p316_p9)  ;;  %v389_v29 = vld [vmem:[%s3482_s1 + $0x58] sm:$0xff] (!%p316_p9)  ;;  %vm872_vm4 = vcmask (!%p316_p9), 261120   ;;  %vm981_vm6 = vcmask (!%p316_p9), 130048   ;;  %s350_s20 = sand.u32 (!%p316_p9), 1, %s2955_s14  }
  0x11   : > { %v2332_v30 = vld [vmem:[%s3483_s2 + $0x2] sm:$0x3] (!%p316_p9)  ;;  %v552_v31 = vld [vmem:[%s3483_s2] sm:$0x3] (!%p316_p9)  ;;  %v2343_v38 = vld [vmem:[%s3483_s2 + $0x4] sm:$0x3] (!%p316_p9) }
  0x12   : > { %2548 = vmatprep.subr.msk.mxu1 (!%p316_p9), %vm568_vm1, %v2332_v30  ;;  %v358_v45 = vld [vmem:[%s3489_s8] sm:$0xff] (!%p316_p9)  ;;  %v359_v46 = vld [vmem:[%s3489_s8 + $0x8] sm:$0xff] (!%p316_p9)  ;;  %v360_v49 = vld [vmem:[%s3489_s8 + $0x10] sm:$0xff] (!%p316_p9)  ;;  %v3178_v55 = vsub.s32 (!%p316_p9), 0, %v3175_v54  ;;  %vm903_vm5 = vcmp.eq.s32.totalorder (!%p316_p9), %v3175_v54, 0  ;;  %s2318_s21 = sshll.u32 (!%p316_p9), %s350_s20, 3 }
  0x13   : > { %2549 = vmatpush3.msk.msra.mxu1 (!%p316_p9), %vm568_vm1, %v2332_v30  ;;  %v3158_v47 = vpack.c.bf16 (!%p316_p9), %v359_v46, %v358_v45  ;;  %v361_v50 = vld [vmem:[%s3489_s8 + $0x18] sm:$0xff] (!%p316_p9)  ;;  %v3183_v56 = vld [vmem:[%s3488_s7] sm:$0x7] (!%p316_p9)  ;;  %s2392_s25 = sshll.u32 (!%p316_p9), %s3045_s17, 7  ;;  %s352_s26 = scalar_lea.vmem (!%p316_p9), [#allocation2], %s2318_s21 }
  0x14   : > { %2556 = vmatprep.subr.msk.mxu1 (!%p316_p9), %vm568_vm1, %v552_v31  ;;  %v3169_v51 = vpack.c.bf16 (!%p316_p9), %v361_v50, %v360_v49  ;;  %v867_v57 = vrot.slane (!%p316_p9), %v3183_v56, %v3178_v55  ;;  %s3438_s30 = scalar_lea.hbm (!%p316_p9), %s3491_s10, %s2392_s25 }
  0x15   : > { %s354_s27 = scalar_select %p353_p10, %s3045_s17, 1 }
  0x16   : > { %s2968_s17 = smov [#allocation2]  }
  0x17   : > { %s2838_s28 = smul.u32 96, %s354_s27  ;;  %s2255_s27 = sshll.u32 %s352_s26, 4  ;;  %s3440_s27 = int_to_ptr.vmem [resolvable:$true] %s2255_s27 }
  0x18   : > { %s2901_s12 = scalar_lea.vmem %s3440_s27, 128  ;;  %s2905_s18 = sshll.u32 %s2968_s17, 4  ;;  %s2906_s18 = int_to_ptr.vmem [resolvable:$false] %s2905_s18 }
  0x19   : > { %s357_s11 = scalar_lea.vmem %s3481_s0, %s2838_s28  ;;  %p2902_p11 = scmp.ne.s32.totalorder %s3440_s27, %s2901_s12 }
  0x1a   : > { %v366_v1 = vld [vmem:[%s357_s11] sm:$0xff]  ;;  %v367_v2 = vld [vmem:[%s357_s11 + $0x8] sm:$0xff]  ;;  %v368_v3 = vld [vmem:[%s357_s11 + $0x10] sm:$0xff]  ;;  %s2907_s21 = scalar_lea.vmem %s2906_s18, 256  ;;  %p2908_p0 = scmp.lt.s32.totalorder %s3440_s27, %s2906_s18 }
  0x1b   : > { %v2722_v4 = vpack.c.bf16 %v367_v2, %v366_v1  ;;  %v369_v5 = vld [vmem:[%s357_s11 + $0x18] sm:$0xff]  ;;  %v370_v7 = vld [vmem:[%s357_s11 + $0x20] sm:$0xff]  ;;  %v371_v8 = vld [vmem:[%s357_s11 + $0x28] sm:$0xff]  ;;  %p2903_p12 = pnand %p2902_p11, %p3062_p5  ;;  %p2909_p1 = scmp.lt.s32.totalorder %s2907_s21, %s2901_s12 }
  0x1c   : > { %v2726_v6 = vpack.c.bf16 %v369_v5, %v368_v3  ;;  %v2730_v9 = vpack.c.bf16 %v371_v8, %v370_v7  ;;  %v372_v10 = vld [vmem:[%s357_s11 + $0x30] sm:$0xff]  ;;  %v373_v11 = vld [vmem:[%s357_s11 + $0x38] sm:$0xff]  ;;  %v374_v13 = vld [vmem:[%s357_s11 + $0x40] sm:$0xff] }
  0x1d   : > { %2723 = vmatprep.subr.bf16.mxu0 %v2722_v4  ;;  %v2734_v12 = vpack.c.bf16 %v373_v11, %v372_v10  ;;  %v375_v14 = vld [vmem:[%s357_s11 + $0x48] sm:$0xff]  ;;  %v376_v16 = vld [vmem:[%s357_s11 + $0x50] sm:$0xff]  ;;  %v377_v17 = vld [vmem:[%s357_s11 + $0x58] sm:$0xff]  ;;  %s2242_s11 = scalar_lea.sflag [#allocation3], %s350_s20  ;;  %p2904_p13 = pneg %p2903_p12 }
  0x1e   : > { %2725 = vmatpush3.bf16.msra.mxu0 %v2722_v4  ;;  %v2738_v15 = vpack.c.bf16 %v375_v14, %v374_v13  ;;  %v2742_v18 = vpack.c.bf16 %v377_v17, %v376_v16  ;;  %p2910_p2 = por %p2909_p1, %p2908_p0 }
  0x1f   : > { %2727 = vmatprep.subr.bf16.mxu0 %v2726_v6 }
  0x20   : > { %p2911_p3 = pnand %p2910_p2, %p2904_p13 }
  0x22   : > { %2729 = vmatpush3.bf16.msra.mxu0 %v2726_v6 }
  0x23   : > { %2731 = vmatprep.subr.bf16.mxu0 %v2730_v9 }
  0x26   : > { %2733 = vmatpush3.bf16.msra.mxu0 %v2730_v9 }
  0x27   : > { %2735 = vmatprep.subr.bf16.mxu0 %v2734_v12 }
  0x2a   : > { %2737 = vmatpush3.bf16.msra.mxu0 %v2734_v12 }
  0x2b   : > { %2739 = vmatprep.subr.bf16.mxu0 %v2738_v15 }
  0x2e   : > { %2741 = vmatpush3.bf16.msra.mxu0 %v2738_v15 }
  0x2f   : > { %2743 = vmatprep.subr.bf16.mxu0 %v2742_v18 }
  0x32   : > { %2745 = vmatpush3.bf16.msra.mxu0 %v2742_v18 }
  0x35   : > { %2531 = vmatmul.mubr.msk.f32.vlgmr.msra.gmra.mrb[0].mxu0 %vm390_vm0, %v379_v19 }
  0x36   : > { %2533 = vmatprep.mubr.msk.f32.mxu0 %vm390_vm0, %v380_v20 }
  0x39   : > { %2534 = vmatmul.mubr.msk.f32.gmra.mrb[2].mxu0 %vm390_vm0, %v381_v21 }
  0x3a   : > { %2536 = vmatprep.mubr.msk.f32.mxu0 %vm390_vm0, %v382_v22 }
  0x3d   : > { %2537 = vmatmul.mubr.msk.f32.gmra.mrb[4].mxu0 %vm390_vm0, %v383_v23 }
  0x3e   : > { %2539 = vmatprep.mubr.msk.f32.mxu0 %vm390_vm0, %v384_v24 }
  0x41   : > { %2540 = vmatmul.mubr.msk.f32.gmra.mrb[6].mxu0 %vm390_vm0, %v385_v25 }
  0x42   : > { %2542 = vmatprep.mubr.msk.f32.mxu0 %vm390_vm0, %v386_v26 }
  0x45   : > { %2543 = vmatmul.mubr.msk.f32.gmra.mrb[8].mxu0 %vm390_vm0, %v387_v27 }
  0x46   : > { %2545 = vmatprep.mubr.msk.f32.mxu0 %vm390_vm0, %v388_v28 }
  0x49   : > { %2546 = vmatmul.mubr.msk.f32.gmra.mrb[10].mxu0 %vm390_vm0, %v389_v29 }
 0x108   : > { %v2532_v32 = vpop.f32.mrb[0].mxu0 }
 0x109   : > { %v493_v33 = vpop.f32.mrb[1].mxu0 }
 0x10c   : > { %v2535_v34 = vpop.f32.mrb[2].mxu0 }
 0x10d   : > { %v503_v35 = vpop.f32.mrb[3].mxu0 }
 0x110   : > { %v2538_v36 = vpop.f32.mrb[4].mxu0 }
 0x111   : > { %v513_v37 = vpop.f32.mrb[5].mxu0 }
 0x112   : > { %2550 = vmatprep.mubr.msk.f32.mxu1 %vm555_vm2, %v513_v37 }
 0x113   : > { %2551 = vmatmul.mubr.msk.f32.vlgmr.msra.gmra.mrb[0].mxu1 %vm555_vm2, %v2538_v36 }
 0x114   : > { %v2541_v39 = vpop.f32.mrb[6].mxu0  ;;  %2557 = vmatpush3.msk.msra.mxu1 %vm568_vm1, %v552_v31 }
 0x115   : > { %v523_v40 = vpop.f32.mrb[7].mxu0  ;;  %2564 = vmatprep.subr.msk.mxu1 %vm568_vm1, %v2343_v38 }
 0x116   : > { %2553 = vmatprep.mubr.msk.f32.mxu1 %vm555_vm2, %v523_v40  ;;  %v2357_v40 = vld [vmem:[%s3485_s4 + $0x20] sm:$0xff] }
 0x117   : > { %2554 = vmatmul.mubr.msk.f32.gmra.mrb[2].mxu1 %vm555_vm2, %v2541_v39  ;;  %v1115_v39 = vld [vmem:[%s3484_s3] sm:$0xff] }
 0x118   : > { %2558 = vmatprep.mubr.msk.f32.mxu1 %vm555_vm2, %v493_v33  ;;  %v2544_v41 = vpop.f32.mrb[8].mxu0  ;;  %v362_v33 = vld [vmem:[%s3490_s9] sm:$0xff] }
 0x119   : > { %v533_v42 = vpop.f32.mrb[9].mxu0 }
 0x11b   : > { %2559 = vmatmul.mubr.msk.f32.vlgmr.msra.gmra.mrb[0].mxu1 %vm555_vm2, %v2532_v32 }
 0x11c   : > { %2561 = vmatprep.mubr.msk.f32.mxu1 %vm555_vm2, %v503_v35  ;;  %2565 = vmatpush3.msk.msra.mxu1 %vm568_vm1, %v2343_v38  ;;  %v2547_v43 = vpop.f32.mrb[10].mxu0 }
 0x11d   : > { %v543_v44 = vpop.f32.mrb[11].mxu0  ;;  %2746 = vmatprep.subr.bf16.mxu1 %v2965_v48 }
 0x11f   : > { %2562 = vmatmul.mubr.msk.f32.gmra.mrb[2].mxu1 %vm555_vm2, %v2535_v34  ;;  %v363_v34 = vld [vmem:[%s3490_s9 + $0x8] sm:$0xff] }
 0x120   : > { %2566 = vmatprep.mubr.msk.f32.mxu1 %vm555_vm2, %v533_v42  ;;  %v3227_v35 = vpack.c.bf16 %v363_v34, %v362_v33  ;;  %v2359_v42 = vld [vmem:[%s3485_s4 + $0x30] sm:$0xff] }
 0x123   : > { %2567 = vmatmul.mubr.msk.f32.vlgmr.msra.gmra.mrb[0].mxu1 %vm555_vm2, %v2544_v41  ;;  %v2358_v41 = vld [vmem:[%s3485_s4 + $0x28] sm:$0xff] }
 0x124   : > { %2569 = vmatprep.mubr.msk.f32.mxu1 %vm555_vm2, %v543_v44  ;;  %2748 = vmatpush3.bf16.msra.mxu1 %v3158_v47  ;;  %v2360_v44 = vld [vmem:[%s3485_s4 + $0x38] sm:$0xff] }
 0x125   : > { %2749 = vmatprep.subr.bf16.mxu1 %v2965_v48  ;;  %v2767_v45 = vpack.c.bf16 %v2360_v44, %v2359_v42  ;;  %v1117_v42 = vld [vmem:[%s3484_s3 + $0x10] sm:$0xff]  ;;  %v1119_v44 = vld [vmem:[%s3484_s3 + $0x20] sm:$0xff] }
 0x127   : > { %2570 = vmatmul.mubr.msk.f32.gmra.mrb[2].mxu1 %vm555_vm2, %v2547_v43  ;;  %v2763_v43 = vpack.c.bf16 %v2358_v41, %v2357_v40  ;;  %v1116_v41 = vld [vmem:[%s3484_s3 + $0x8] sm:$0xff] }
 0x128   : > { %2580 = vmatprep.mubr.msk.f32.mxu1 %vm2966_vm3, %v2967_v52  ;;  %2751 = vmatpush3.bf16.msra.mxu1 %v3169_v51 }
 0x129   : > { %2752 = vmatprep.subr.bf16.mxu1 %v2965_v48  ;;  %2764 = vmatprep.subr.bf16.mxu0 %v2763_v43 }
 0x12a   : > { %2766 = vmatpush3.bf16.msra.mxu0 %v2763_v43  ;;  %v1118_v43 = vld [vmem:[%s3484_s3 + $0x18] sm:$0xff] }
 0x12b   : > { %2768 = vmatprep.subr.bf16.mxu0 %v2767_v45 }
 0x12e   : > { %2770 = vmatpush3.bf16.msra.mxu0 %v2767_v45  ;;  %v1120_v45 = vld [vmem:[%s3484_s3 + $0x28] sm:$0xff] }
 0x1f6   : > { %v2568_v58 = vpop.f32.mrb[0].mxu1 }
 0x1f7   : > { %v3187_v59 = vadd.f32 %v2568_v58, %v867_v57  ;;  %v840_v60 = vpop.f32.mrb[1].mxu1 }
 0x1f8   : > { %v3189_v61 = vadd.f32 %v867_v57, %v840_v60 }
 0x1f9   : > { %v887_v62 = vmul.f32 %v3187_v59, %v3187_v59  ;;  %v874_v63 = vsel %vm872_vm4, %v3187_v59, 0.0 }
 0x1fa   : > { %v873_v0 = vsel %vm872_vm4, %v3189_v61, 0.0  ;;  %v886_v1 = vmul.f32 %v3189_v61, %v3189_v61  ;;  %v2571_v2 = vpop.f32.mrb[2].mxu1 }
 0x1fb   : > { %v3199_v3 = vadd.f32 %v2571_v2, %v867_v57  ;;  %v850_v4 = vpop.f32.mrb[3].mxu1  ;;  %v891_v5 = vsel %vm872_vm4, %v887_v62, 0.0  ;;  %v875_v8 = vadd.f32 %v874_v63, %v873_v0  ;;  %v3249_v63 = vsub.s32 1, %v3175_v54 }
 0x1fc   : > { %v890_v6 = vsel %vm872_vm4, %v886_v1, 0.0  ;;  %v3203_v7 = vadd.f32 %v867_v57, %v850_v4  ;;  %v3252_v0 = vsub.s32 2, %v3175_v54 }
 0x1fd   : > { %v889_v9 = vmul.f32 %v3199_v3, %v3199_v3  ;;  %v892_v12 = vadd.f32 %v891_v5, %v890_v6  ;;  %v878_v14 = vsel %vm872_vm4, %v3199_v3, 0.0  ;;  %v1082_v2 = vrot.slane %v3183_v56, %v3249_v63 }
 0x1fe   : > { %v876_v10 = vsel %vm872_vm4, %v3203_v7, 0.0  ;;  %v888_v11 = vmul.f32 %v3203_v7, %v3203_v7 }
 0x1ff   : > { %v877_v13 = vadd.f32 %v876_v10, %v875_v8  ;;  %v895_v18 = vsel %vm872_vm4, %v889_v9, 0.0  ;;  %v1090_v10 = vrot.slane %v3183_v56, %v3252_v0 }
 0x200   : > { %v893_v15 = vsel %vm872_vm4, %v888_v11, 0.0 }
 0x201   : > { %v879_v16 = vadd.f32 %v878_v14, %v877_v13  ;;  %v894_v17 = vadd.f32 %v893_v15, %v892_v12 }
 0x203   : > { %v880_v19 = vrot.slane %v879_v16, 4  ;;  %v896_v20 = vadd.f32 %v895_v18, %v894_v17 }
 0x205   : > { %v881_v21 = vadd.f32 %v880_v19, %v879_v16  ;;  %v897_v22 = vrot.slane %v896_v20, 4 }
 0x207   : > { %v882_v23 = vrot.slane %v881_v21, 2  ;;  %v898_v24 = vadd.f32 %v897_v22, %v896_v20 }
 0x209   : > { %v883_v25 = vadd.f32 %v882_v23, %v881_v21  ;;  %v899_v26 = vrot.slane %v898_v24, 2 }
 0x20b   : > { %v884_v27 = vrot.slane %v883_v25, 1  ;;  %v900_v28 = vadd.f32 %v899_v26, %v898_v24 }
 0x20d   : > { %v901_v29 = vrot.slane %v900_v28, 1  ;;  %v885_v30 = vadd.f32 %v884_v27, %v883_v25 }
 0x20f   : > { %v902_v31 = vadd.f32 %v901_v29, %v900_v28 }
 0x211   : > { %v906_v32 = vsel %vm903_vm5, %v885_v30, %v902_v31 }
 0x212   : > { %2581 = vmatmul.mubr.msk.f32.vlgmr.msra.gmra.mrb[4].mxu1 %vm872_vm4, %v906_v32 }
 0x213   : > { %2587 = vmatprep.mubr.msk.f32.mxu1 %vm2966_vm3, %v2967_v52  ;;  %2754 = vmatpush3.bf16.msra.mxu1 %v3227_v35 }
 0x2e5   : > { %v976_v36 = vpop.f32.mrb[4].mxu1 }
 0x2e6   : > { %v980_v37 = vmul.f32 0.015625, %v976_v36  ;;  %v2582_v38 = vpop.f32.mrb[5].mxu1 }
 0x2e8   : > { %2588 = vmatmul.mubr.msk.f32.vlgmr.msra.gmra.mrb[6].mxu1 %vm981_vm6, %v980_v37 }
 0x2e9   : > { %2598 = vmatprep.mubr.msk.f32.mxu1 %vm872_vm4, %v1115_v39 }
 0x3bb   : > { %v1051_v46 = vpop.f32.mrb[6].mxu1 }
 0x3bc   : > { %v1055_v49 = vmul.f32 %v1051_v46, %v1051_v46  ;;  %v2589_v50 = vpop.f32.mrb[7].mxu1  ;;  %v1064_v62 = vrot.slane %v1051_v46, %v3178_v55 }
 0x3be   : > { %v1057_v53 = vrot.slane %v1055_v49, 7  ;;  %v1065_v4 = vsub.f32 %v3189_v61, %v1064_v62  ;;  %v1066_v5 = vsub.f32 %v3187_v59, %v1064_v62  ;;  %v1067_v6 = vsub.f32 %v3203_v7, %v1064_v62  ;;  %v1235_v49 = vld [vmem:[%s3485_s4 + $0x8] sm:$0xff] }
 0x3bf   : > { %v1068_v8 = vsub.f32 %v3199_v3, %v1064_v62 }
 0x3c0   : > { %v1059_v57 = vsub.f32 %v1051_v46, %v1057_v53  ;;  %v1234_v46 = vld [vmem:[%s3485_s4] sm:$0xff] }
 0x3c1   : > { %v2771_v50 = vpack.c.bf16 %v1235_v49, %v1234_v46 }
 0x3c2   : > { %v1060_v58 = vmax.f32 %v1059_v57, 0.0 }
 0x3c3   : > { %2772 = vmatprep.subr.bf16.mxu0 %v2771_v50 }
 0x3c4   : > { %v1069_v60 = vadd.f32 1e-05, %v1060_v58  ;;  %v1236_v58 = vld [vmem:[%s3485_s4 + $0x10] sm:$0xff] }
 0x3c6   : > { %2881 = vrsqrt.f32 %v1069_v60  ;;  %v1237_v60 = vld [vmem:[%s3485_s4 + $0x18] sm:$0xff] }
 0x3d0   : > { %v2882_v1 = vpop.eup %2881 }
 0x3d1   : > { %v1074_v9 = vrot.slane %v2882_v1, %v3249_v63 }
 0x3d3   : > { %v1075_v11 = vmul.f32 %v1074_v9, %v1065_v4  ;;  %v1076_v12 = vmul.f32 %v1074_v9, %v1066_v5  ;;  %v1077_v13 = vmul.f32 %v1074_v9, %v1067_v6  ;;  %v1078_v14 = vmul.f32 %v1074_v9, %v1068_v8  ;;  %v2365_v4 = vld [vmem:[%s3485_s4 + $0x40] sm:$0xff]  ;;  %v2366_v5 = vld [vmem:[%s3485_s4 + $0x48] sm:$0xff] }
 0x3d4   : > { %v2779_v8 = vpack.c.bf16 %v2366_v5, %v2365_v4 }
 0x3d5   : > { %v1083_v15 = vmul.f32 %v1082_v2, %v1075_v11  ;;  %v1084_v16 = vmul.f32 %v1082_v2, %v1076_v12  ;;  %v1085_v17 = vmul.f32 %v1082_v2, %v1077_v13  ;;  %v1086_v18 = vmul.f32 %v1082_v2, %v1078_v14  ;;  %v2368_v11 = vld [vmem:[%s3485_s4 + $0x58] sm:$0xff]  ;;  %v2371_v13 = vld [vmem:[%s3488_s7 + $0x4] sm:$0x7] }
 0x3d6   : > { %v2775_v2 = vpack.c.bf16 %v1237_v60, %v1236_v58  ;;  %v1498_v14 = vrot.slane %v2371_v13, %v3178_v55 }
 0x3d7   : > { %v1091_v61 = vadd.f32 %v1090_v10, %v1083_v15  ;;  %v1092_v19 = vadd.f32 %v1090_v10, %v1084_v16  ;;  %v1093_v59 = vadd.f32 %v1090_v10, %v1085_v17  ;;  %v1094_v20 = vadd.f32 %v1090_v10, %v1086_v18  ;;  %v2367_v10 = vld [vmem:[%s3485_s4 + $0x50] sm:$0xff] }
 0x3d8   : > { %v2783_v12 = vpack.c.bf16 %v2368_v11, %v2367_v10 }
 0x3d9   : > { %v1099_v7 = vmul.f32 0.70710677, %v1091_v61  ;;  %v1100_v21 = vmul.f32 0.70710677, %v1092_v19  ;;  %v1101_v3 = vmul.f32 0.70710677, %v1093_v59 }
 0x3da   : > { %v1102_v22 = vmul.f32 0.70710677, %v1094_v20  ;;  %v1095_v24 = vmul.f32 0.5, %v1091_v61  ;;  %v1096_v27 = vmul.f32 0.5, %v1092_v19  ;;  %v1097_v31 = vmul.f32 0.5, %v1093_v59 }
 0x3db   : > { %2883 = verf.f32 %v1099_v7  ;;  %v1098_v34 = vmul.f32 0.5, %v1094_v20 }
 0x3dc   : > { %2885 = verf.f32 %v1100_v21 }
 0x3dd   : > { %2887 = verf.f32 %v1101_v3 }
 0x3de   : > { %2889 = verf.f32 %v1102_v22 }
 0x3e5   : > { %v2884_v56 = vpop.eup %2883 }
 0x3e6   : > { %v2886_v23 = vpop.eup %2885  ;;  %v1107_v25 = vadd.f32 1.0, %v2884_v56 }
 0x3e7   : > { %v2888_v26 = vpop.eup %2887  ;;  %v1108_v28 = vadd.f32 1.0, %v2886_v23 }
 0x3e8   : > { %v2890_v29 = vpop.eup %2889  ;;  %v1111_v30 = vmul.f32 %v1107_v25, %v1095_v24  ;;  %v1109_v32 = vadd.f32 1.0, %v2888_v26 }
 0x3e9   : > { %v1112_v33 = vmul.f32 %v1108_v28, %v1096_v27  ;;  %v1110_v36 = vadd.f32 1.0, %v2890_v29 }
 0x3ea   : > { %v1113_v37 = vmul.f32 %v1109_v32, %v1097_v31 }
 0x3eb   : > { %v2755_v38 = vpack.c.bf16 %v1112_v33, %v1111_v30  ;;  %v1114_v39 = vmul.f32 %v1110_v36, %v1098_v34 }
 0x3ed   : > { %2756 = vmatprep.subr.bf16.mxu1 %v2755_v38  ;;  %v2759_v40 = vpack.c.bf16 %v1114_v39, %v1113_v37  ;;  %v1803_v39 = vld [vmem:[%s3487_s6] sm:$0xff] }
 0x3ee   : > { %2758 = vmatpush3.bf16.msra.mxu1 %v2755_v38 }
 0x3ef   : > { %2760 = vmatprep.subr.bf16.mxu1 %v2759_v40 }
 0x3f2   : > { %2762 = vmatpush3.bf16.msra.mxu1 %v2759_v40  ;;  %v1804_v40 = vld [vmem:[%s3487_s6 + $0x8] sm:$0xff] }
 0x3f3   : > { %2787 = vmatprep.subr.bf16.mxu1 %v2965_v48 }
 0x3f5   : > { %2599 = vmatmul.mubr.msk.f32.vlgmr.msra.gmra.mrb[8].mxu1 %vm872_vm4, %v1116_v41  ;;  %v1805_v41 = vld [vmem:[%s3487_s6 + $0x10] sm:$0xff] }
 0x3f6   : > { %2601 = vmatprep.mubr.msk.f32.mxu1 %vm872_vm4, %v1117_v42  ;;  %2789 = vmatpush3.bf16.msra.mxu1 %v3158_v47  ;;  %v1806_v42 = vld [vmem:[%s3487_s6 + $0x18] sm:$0xff] }
 0x3f7   : > { %2790 = vmatprep.subr.bf16.mxu1 %v2965_v48 }
 0x3f9   : > { %2602 = vmatmul.mubr.msk.f32.gmra.mrb[10].mxu1 %vm872_vm4, %v1118_v43  ;;  %v2806_v43 = vpack.c.bf16 %v1804_v40, %v1803_v39 }
 0x3fa   : > { %2604 = vmatprep.mubr.msk.f32.mxu1 %vm872_vm4, %v1119_v44  ;;  %2792 = vmatpush3.bf16.msra.mxu1 %v3169_v51  ;;  %v2809_v44 = vpack.c.bf16 %v1806_v42, %v1805_v41 }
 0x3fb   : > { %2793 = vmatprep.subr.bf16.mxu1 %v2965_v48 }
 0x3fd   : > { %2605 = vmatmul.mubr.msk.f32.gmra.mrb[12].mxu1 %vm872_vm4, %v1120_v45 }
 0x3fe   : > { %2648 = vmatprep.mubr.msk.f32.mxu1 %vm2966_vm3, %v2967_v52 }
 0x4c8   : > { %v2600_v53 = vpop.f32.mrb[8].mxu1 }
 0x4c9   : > { %v1205_v57 = vpop.f32.mrb[9].mxu1 }
 0x4cc   : > { %v2603_v62 = vpop.f32.mrb[10].mxu1 }
 0x4cd   : > { %v1215_v1 = vpop.f32.mrb[11].mxu1 }
 0x4ce   : > { %2615 = vmatprep.mubr.msk.f32.mxu0 %vm872_vm4, %v1215_v1  ;;  %v1692_v1 = vrot.slane %v2371_v13, %v3249_v63 }
 0x4cf   : > { %2616 = vmatmul.mubr.msk.f32.vlgmr.msra.gmra.mrb[12].mxu0 %vm872_vm4, %v2603_v62 }
 0x4d0   : > { %2774 = vmatpush3.bf16.msra.mxu0 %v2771_v50  ;;  %2626 = vmatprep.mubr.msk.f32.mxu0 %vm872_vm4, %v1205_v57  ;;  %v2606_v6 = vpop.f32.mrb[12].mxu1 }
 0x4d1   : > { %2776 = vmatprep.subr.bf16.mxu0 %v2775_v2  ;;  %v1225_v9 = vpop.f32.mrb[13].mxu1 }
 0x4d4   : > { %2778 = vmatpush3.bf16.msra.mxu0 %v2775_v2 }
 0x4d5   : > { %2780 = vmatprep.subr.bf16.mxu0 %v2779_v8 }
 0x4d7   : > { %2627 = vmatmul.mubr.msk.f32.vlgmr.msra.gmra.mrb[12].mxu0 %vm872_vm4, %v2600_v53 }
 0x4d8   : > { %2782 = vmatpush3.bf16.msra.mxu0 %v2779_v8  ;;  %2637 = vmatprep.mubr.msk.f32.mxu0 %vm872_vm4, %v1225_v9 }
 0x4d9   : > { %2784 = vmatprep.subr.bf16.mxu0 %v2783_v12 }
 0x4dc   : > { %2786 = vmatpush3.bf16.msra.mxu0 %v2783_v12 }
 0x4dd   : > { %2805 = vmatprep.subr.bf16.mxu0 %v2965_v48 }
 0x4df   : > { %2638 = vmatmul.mubr.msk.f32.vlgmr.msra.gmra.mrb[12].mxu0 %vm872_vm4, %v2606_v6  ;;  %v1698_v6 = vrot.slane %v2371_v13, %v3252_v0  ;;  %v2377_v13 = vld [vmem:[%s3487_s6 + $0x20] sm:$0xff] }
 0x4e0   : > { %2690 = vmatprep.mubr.msk.f32.mxu0 %vm2966_vm3, %v2967_v52  ;;  %2807 = vmatpush3.bf16.msra.mxu0 %v2806_v43 }
 0x4e1   : > { %2808 = vmatprep.subr.bf16.mxu0 %v2965_v48 }
 0x4e4   : > { %2810 = vmatpush3.bf16.msra.mxu0 %v2809_v44 }
 0x4e5   : > { %2817 = vmatprep.subr.bf16.mxu0 %v2965_v48 }
 0x5b2   : > { %v2639_v15 = vpop.f32.mrb[12].mxu0 }
 0x5b3   : > { %v1500_v16 = vadd.f32 %v2639_v15, %v1498_v14  ;;  %v1482_v17 = vpop.f32.mrb[13].mxu0 }
 0x5b4   : > { %v1499_v18 = vadd.f32 %v1498_v14, %v1482_v17 }
 0x5b5   : > { %v1502_v61 = vsel %vm872_vm4, %v1500_v16, 0.0  ;;  %v1511_v19 = vmul.f32 %v1500_v16, %v1500_v16 }
 0x5b6   : > { %v1501_v59 = vsel %vm872_vm4, %v1499_v18, 0.0  ;;  %v1510_v20 = vmul.f32 %v1499_v18, %v1499_v18 }
 0x5b7   : > { %v1513_v7 = vsel %vm872_vm4, %v1511_v19, 0.0  ;;  %v1503_v21 = vadd.f32 %v1502_v61, %v1501_v59 }
 0x5b8   : > { %v1512_v3 = vsel %vm872_vm4, %v1510_v20, 0.0 }
 0x5b9   : > { %v1504_v22 = vrot.slane %v1503_v21, 4  ;;  %v1514_v56 = vadd.f32 %v1513_v7, %v1512_v3  ;;  %v2378_v3 = vld [vmem:[%s3487_s6 + $0x28] sm:$0xff] }
 0x5bb   : > { %v1505_v23 = vadd.f32 %v1504_v22, %v1503_v21  ;;  %v1515_v24 = vrot.slane %v1514_v56, 4 }
 0x5bd   : > { %v1506_v25 = vrot.slane %v1505_v23, 2  ;;  %v1516_v26 = vadd.f32 %v1515_v24, %v1514_v56  ;;  %v1711_v56 = vld [vmem:[%s3486_s5] sm:$0xff]  ;;  %v1712_v24 = vld [vmem:[%s3486_s5 + $0x8] sm:$0xff] }
 0x5bf   : > { %v1507_v27 = vadd.f32 %v1506_v25, %v1505_v23  ;;  %v1517_v28 = vrot.slane %v1516_v26, 2  ;;  %v2800_v23 = vpack.c.bf16 %v2378_v3, %v2377_v13  ;;  %v1713_v25 = vld [vmem:[%s3486_s5 + $0x10] sm:$0xff] }
 0x5c1   : > { %v1508_v29 = vrot.slane %v1507_v27, 1  ;;  %v1518_v30 = vadd.f32 %v1517_v28, %v1516_v26  ;;  %v2379_v26 = vld [vmem:[%s3487_s6 + $0x30] sm:$0xff] }
 0x5c3   : > { %v1519_v31 = vrot.slane %v1518_v30, 1  ;;  %v1509_v32 = vadd.f32 %v1508_v29, %v1507_v27  ;;  %v2380_v27 = vld [vmem:[%s3487_s6 + $0x38] sm:$0xff]  ;;  %v2383_v29 = vld [vmem:[%s3487_s6 + $0x40] sm:$0xff] }
 0x5c4   : > { %v2803_v28 = vpack.c.bf16 %v2380_v27, %v2379_v26 }
 0x5c5   : > { %v1520_v33 = vadd.f32 %v1519_v31, %v1518_v30  ;;  %v2384_v30 = vld [vmem:[%s3487_s6 + $0x48] sm:$0xff] }
 0x5c7   : > { %v1521_v34 = vsel %vm903_vm5, %v1509_v32, %v1520_v33  ;;  %v2812_v33 = vpack.c.bf16 %v2384_v30, %v2383_v29 }
 0x5c8   : > { %2649 = vmatmul.mubr.msk.f32.vlgmr.msra.gmra.mrb[14].mxu1 %vm872_vm4, %v1521_v34  ;;  %v2385_v34 = vld [vmem:[%s3487_s6 + $0x50] sm:$0xff] }
 0x5c9   : > { %2795 = vmatpush3.bf16.msra.mxu1 %v3227_v35  ;;  %2655 = vmatprep.mubr.msk.f32.mxu1 %vm2966_vm3, %v2967_v52 }
 0x5ca   : > { %2796 = vmatprep.subr.bf16.mxu1 %v2965_v48 }
 0x69b   : > { %v1591_v36 = vpop.f32.mrb[14].mxu1 }
 0x69c   : > { %v1595_v37 = vmul.f32 0.03125, %v1591_v36  ;;  %v2650_v38 = vpop.f32.mrb[15].mxu1  ;;  %v2386_v36 = vld [vmem:[%s3487_s6 + $0x58] sm:$0xff] }
 0x69d   : > { %v2815_v39 = vpack.c.bf16 %v2386_v36, %v2385_v34 }
 0x69e   : > { %2656 = vmatmul.mubr.msk.f32.vlgmr.msra.gmra.mrb[16].mxu1 %vm981_vm6, %v1595_v37 }
 0x69f   : > { %2662 = vmatprep.mubr.msk.f32.mxu1 %vm2966_vm3, %v2967_v52 }
 0x771   : > { %v1665_v45 = vpop.f32.mrb[16].mxu1 }
 0x772   : > { %v1669_v46 = vmul.f32 %v1665_v45, %v1665_v45  ;;  %v2657_v49 = vpop.f32.mrb[17].mxu1  ;;  %v1678_v60 = vrot.slane %v1665_v45, %v3178_v55 }
 0x774   : > { %v1671_v50 = vrot.slane %v1669_v46, 7  ;;  %v1679_v2 = vsub.f32 %v1499_v18, %v1678_v60  ;;  %v1680_v4 = vsub.f32 %v1500_v16, %v1678_v60 }
 0x776   : > { %v1673_v53 = vsub.f32 %v1665_v45, %v1671_v50 }
 0x778   : > { %v1674_v57 = vmax.f32 %v1673_v53, 0.0 }
 0x77a   : > { %v1681_v58 = vadd.f32 1e-05, %v1674_v57 }
 0x77c   : > { %2891 = vrsqrt.f32 %v1681_v58 }
 0x786   : > { %v2892_v62 = vpop.eup %2891 }
 0x787   : > { %v1686_v5 = vrot.slane %v2892_v62, %v3249_v63 }
 0x789   : > { %v1687_v8 = vmul.f32 %v1686_v5, %v1679_v2  ;;  %v1688_v9 = vmul.f32 %v1686_v5, %v1680_v4 }
 0x78b   : > { %v1693_v10 = vmul.f32 %v1692_v1, %v1687_v8  ;;  %v1694_v11 = vmul.f32 %v1692_v1, %v1688_v9 }
 0x78d   : > { %v1699_v12 = vadd.f32 %v1698_v6, %v1693_v10  ;;  %v1700_v14 = vadd.f32 %v1698_v6, %v1694_v11 }
 0x78f   : > { %v1703_v15 = vmul.f32 0.70710677, %v1699_v12  ;;  %v1704_v17 = vmul.f32 0.70710677, %v1700_v14  ;;  %v1701_v59 = vmul.f32 0.5, %v1699_v12  ;;  %v1702_v18 = vmul.f32 0.5, %v1700_v14 }
 0x791   : > { %2893 = verf.f32 %v1703_v15 }
 0x792   : > { %2895 = verf.f32 %v1704_v17 }
 0x79b   : > { %v2894_v61 = vpop.eup %2893 }
 0x79c   : > { %v2896_v19 = vpop.eup %2895  ;;  %v1707_v20 = vadd.f32 1.0, %v2894_v61 }
 0x79d   : > { %v1708_v16 = vadd.f32 1.0, %v2896_v19 }
 0x79e   : > { %v1709_v7 = vmul.f32 %v1707_v20, %v1701_v59 }
 0x79f   : > { %v1710_v21 = vmul.f32 %v1708_v16, %v1702_v18 }
 0x7a1   : > { %v2797_v22 = vpack.c.bf16 %v1710_v21, %v1709_v7 }
 0x7a3   : > { %2798 = vmatpush3.bf16.msra.mxu1 %v2797_v22 }
 0x7a4   : > { %2799 = vmatprep.subr.bf16.mxu1 %v2965_v48 }
 0x7a6   : > { %2663 = vmatmul.mubr.msk.f32.vlgmr.msra.gmra.mrb[18].mxu1 %vm981_vm6, %v1711_v56 }
 0x7a7   : > { %2665 = vmatprep.mubr.msk.f32.mxu1 %vm2966_vm3, %v2967_v52  ;;  %2801 = vmatpush3.bf16.msra.mxu1 %v2800_v23 }
 0x7a8   : > { %2802 = vmatprep.subr.bf16.mxu1 %v2965_v48 }
 0x7aa   : > { %2666 = vmatmul.mubr.msk.f32.gmra.mrb[20].mxu1 %vm981_vm6, %v1712_v24 }
 0x7ab   : > { %2668 = vmatprep.mubr.msk.f32.mxu1 %vm2966_vm3, %v2967_v52  ;;  %2804 = vmatpush3.bf16.msra.mxu1 %v2803_v28 }
 0x7ac   : > { %2811 = vmatprep.subr.bf16.mxu1 %v2965_v48 }
 0x7ae   : > { %2669 = vmatmul.mubr.msk.f32.gmra.mrb[22].mxu1 %vm981_vm6, %v1713_v25 }
 0x7af   : > { %2679 = vmatprep.mubr.msk.f32.mxu1 %vm2966_vm3, %v2967_v52 }
 0x879   : > { %v1789_v31 = vpop.f32.mrb[18].mxu1 }
 0x87a   : > { %v2664_v32 = vpop.f32.mrb[19].mxu1  ;;  %2691 = vmatmul.mubr.msk.f32.vlgmr.msra.gmra.mrb[14].mxu0 %vm872_vm4, %v1789_v31 }
 0x87b   : > { %2819 = vmatpush3.bf16.msra.mxu0 %v3158_v47  ;;  %2712 = vmatprep.mubr.msk.f32.mxu0 %vm2966_vm3, %v2967_v52 }
 0x87c   : > { %2820 = vmatprep.subr.bf16.mxu0 %v2965_v48 }
 0x87d   : > { %v1794_v37 = vpop.f32.mrb[20].mxu1 }
 0x87e   : > { %v2667_v38 = vpop.f32.mrb[21].mxu1  ;;  %2680 = vmatmul.mubr.msk.f32.vlgmr.msra.gmra.mrb[24].mxu1 %vm872_vm4, %v1794_v37 }
 0x87f   : > { %2813 = vmatpush3.bf16.msra.mxu1 %v2812_v33  ;;  %2701 = vmatprep.mubr.msk.f32.mxu1 %vm2966_vm3, %v2967_v52 }
 0x880   : > { %2814 = vmatprep.subr.bf16.mxu1 %v2965_v48  ;;  %2822 = vmatpush3.bf16.msra.mxu0 %v3169_v51  ;;  %v2388_v51 = vld [vmem:[%s3488_s7 + $0x8] sm:$0x7] }
 0x881   : > { %v1799_v47 = vpop.f32.mrb[22].mxu1  ;;  %v2042_v46 = vrot.slane %v2388_v51, %v3178_v55  ;;  %v2228_v13 = vrot.slane %v2388_v51, %v3249_v63  ;;  %v2233_v56 = vrot.slane %v2388_v51, %v3252_v0 }
 0x882   : > { %v2670_v40 = vpop.f32.mrb[23].mxu1 }
 0x883   : > { %2816 = vmatpush3.bf16.msra.mxu1 %v2815_v39 }
 0x884   : > { %2823 = vmatprep.subr.bf16.mxu1 %v2965_v48 }
 0x886   : > { %2702 = vmatmul.mubr.msk.f32.vlgmr.msra.gmra.mrb[26].mxu1 %vm872_vm4, %v1799_v47 }
 0x887   : > { %2825 = vmatpush3.bf16.msra.mxu1 %v3227_v35  ;;  %2719 = vmatprep.mubr.msk.f32.mxu1 %vm2966_vm3, %v2967_v52 }
 0x94d   : > { %v1954_v41 = vpop.f32.mrb[14].mxu0 }
 0x94e   : > { %v2692_v42 = vpop.f32.mrb[15].mxu0 }
 0x951   : > { %v1881_v43 = vpop.f32.mrb[24].mxu1 }
 0x952   : > { %v1955_v44 = vadd.f32 %v1954_v41, %v1881_v43  ;;  %v2681_v45 = vpop.f32.mrb[25].mxu1 }
 0x959   : > { %v2032_v49 = vpop.f32.mrb[26].mxu1 }
 0x95a   : > { %v2036_v48 = vadd.f32 %v2032_v49, %v1955_v44  ;;  %v2703_v50 = vpop.f32.mrb[27].mxu1 }
 0x95c   : > { %v2043_v53 = vadd.f32 %v2042_v46, %v2036_v48 }
 0x95e   : > { %v2044_v35 = vsel %vm872_vm4, %v2043_v53, 0.0  ;;  %v2051_v57 = vmul.f32 %v2043_v53, %v2043_v53 }
 0x95f   : > { %v2045_v58 = vrot.slane %v2044_v35, 4 }
 0x960   : > { %v2052_v52 = vsel %vm872_vm4, %v2051_v57, 0.0 }
 0x961   : > { %v2046_v60 = vadd.f32 %v2045_v58, %v2044_v35  ;;  %v2053_v62 = vrot.slane %v2052_v52, 4 }
 0x963   : > { %v2047_v1 = vrot.slane %v2046_v60, 2  ;;  %v2054_v2 = vadd.f32 %v2053_v62, %v2052_v52 }
 0x965   : > { %v2048_v4 = vadd.f32 %v2047_v1, %v2046_v60  ;;  %v2055_v5 = vrot.slane %v2054_v2, 2 }
 0x967   : > { %v2049_v6 = vrot.slane %v2048_v4, 1  ;;  %v2056_v8 = vadd.f32 %v2055_v5, %v2054_v2 }
 0x969   : > { %v2057_v9 = vrot.slane %v2056_v8, 1  ;;  %v2050_v10 = vadd.f32 %v2049_v6, %v2048_v4 }
 0x96b   : > { %v2058_v11 = vadd.f32 %v2057_v9, %v2056_v8 }
 0x96d   : > { %v2059_v12 = vsel %vm903_vm5, %v2050_v10, %v2058_v11 }
 0x96e   : > { %2713 = vmatmul.mubr.msk.f32.vlgmr.msra.gmra.mrb[16].mxu0 %vm872_vm4, %v2059_v12 }
 0xa41   : > { %v2129_v14 = vpop.f32.mrb[16].mxu0 }
 0xa42   : > { %v2133_v15 = vmul.f32 0.0625, %v2129_v14  ;;  %v2714_v17 = vpop.f32.mrb[17].mxu0 }
 0xa44   : > { %2720 = vmatmul.mubr.msk.f32.vlgmr.msra.gmra.mrb[28].mxu1 %vm981_vm6, %v2133_v15 }
 0xb17   : > { %v2203_v61 = vpop.f32.mrb[28].mxu1 }
 0xb18   : > { %v2207_v19 = vmul.f32 %v2203_v61, %v2203_v61  ;;  %v2721_v59 = vpop.f32.mrb[29].mxu1  ;;  %v2216_v54 = vrot.slane %v2203_v61, %v3178_v55 }
 0xb1a   : > { %v2209_v20 = vrot.slane %v2207_v19, 7  ;;  %v2217_v3 = vsub.f32 %v2043_v53, %v2216_v54 }
 0xb1c   : > { %v2211_v18 = vsub.f32 %v2203_v61, %v2209_v20 }
 0xb1e   : > { %v2212_v16 = vmax.f32 %v2211_v18, 0.0 }
 0xb20   : > { %v2218_v7 = vadd.f32 1e-05, %v2212_v16 }
 0xb22   : > { %2897 = vrsqrt.f32 %v2218_v7 }
 0xb2c   : > { %v2898_v21 = vpop.eup %2897 }
 0xb2d   : > { %v2223_v22 = vrot.slane %v2898_v21, %v3249_v63 }
 0xb2f   : > { %v2224_v23 = vmul.f32 %v2223_v22, %v2217_v3 }
 0xb31   : > { %v2229_v24 = vmul.f32 %v2228_v13, %v2224_v23 }
 0xb33   : > { %v2234_v25 = vadd.f32 %v2233_v56, %v2229_v24 }
 0xb35   : > { %v2236_v26 = vmul.f32 0.70710677, %v2234_v25  ;;  %v2235_v55 = vmul.f32 0.5, %v2234_v25 }
 0xb37   : > { %2899 = verf.f32 %v2236_v26 }
 0xb41   : > { %v2900_v27 = vpop.eup %2899 }
 0xb42   : > { %v2238_v28 = vadd.f32 1.0, %v2900_v27 }
 0xb44   : > { %v2239_v29 = vmul.f32 %v2238_v28, %v2235_v55 }
 0xb46   : > { %2240 = vst.msk [vmem:[%s352_s26] sm:$0xff] %vm872_vm4, %v2239_v29 }
 0xb47   : > { %2914 = shalt.err (!%p2911_p3)
}
 0xb48   : > { %s2915_s20 = scalar_lea.hbm %s3438_s30, 128  ;;  %s2919_s28 = scalar_lea.hbm %s3491_s10, 256 }
 0xb49   : > { %p2916_p4 = scmp.ne.s32.totalorder %s3438_s30, %s2915_s20  ;;  %p2920_p9 = scmp.lt.u32.totalorder %s3438_s30, %s3491_s10 }
 0xb4a   : > { %p2921_p10 = scmp.lt.u32.totalorder %s2919_s28, %s2915_s20  ;;  %p2923_p12 = scmp.lt.u32.totalorder %s2915_s20, %s3438_s30 }
 0xb4b   : > { %p2917_p7 = pnand %p2916_p4, %p3062_p5 }
 0xb4c   : > { %p2922_p11 = por %p2921_p10, %p2920_p9 }
 0xb4d   : > { %p2918_p8 = pneg %p2917_p7 }
 0xb4e   : > { %p2924_p13 = por %p2923_p12, %p2922_p11 }
 0xb50   : > { %p2925_p0 = pnand %p2924_p13, %p2918_p8 }
 0xb52   : > { %2928 = shalt.err (!%p2925_p0)
}
 0xb53   : > { %2839 = dma.vmem_to_hbm [thread:$0]  (%p3062_p5), %s3440_s27, 128, %s3438_s30, %s2242_s11  }
 0xb54 PF: > { %p2845_p1 = scmp.ge.s32.totalorder %s2963_s16, 2  ;;  %s2267_s12 = sand.u32 1, %s2951_s13  }
 0xb55   : > { %s2268_s18 = scalar_lea.sflag [#allocation3], %s2267_s12 }
 0xb56   : > { %p2842_p2 = pnand %p2845_p1, %p3066_p6 }
 0xb58   : > { %2946 = dma.done.wait (!%p2842_p2), %s2268_s18, 128  }
 0xb59   : > { %2948 = vsyncadd (!%p2842_p2), %s2268_s18, 4294967168  ;;  %p20_p3 = scmp.ge.s32.totalorder %s3049_s19, 4   ;;  %s3494_s13 = smov %s2955_s14 }
 0xb5a   : > { %s3495_s14 = smov %s2959_s15  ;;  %s3496_s15 = smov %s3060_s22 }
 0xb5b   : > { %s3497_s16 = smov %s3049_s19  ;;  %22 = sbr.rel (!%p20_p3) target bundleno = 3 (0x3), region = 103 }
 0xb62   :  { %2273 = vsyncpa [#allocation3], 1 }
 0xb63   :  { %2275 = vsyncpa [#allocation3 + $0x1], 1 }

</bundles_post_ra>
